<compile_context>
chip_gen: v7x
topology: tpu7x:2x2x1
jax: 0.10.0
libtpu: 0.0.40
codegen_flags: <defaults>
</compile_context>

<pallas_src>
import functools
import math

import numpy as np
import jax
import jax.numpy as jnp
from jax import lax
from jax.experimental import pallas as pl
from jax.experimental.pallas import tpu as pltpu


def _round_up(x, m):
    return (x + m - 1) // m * m


# ----------------------------------------------------------------------------
# Pallas kernel: implicit-GEMM conv, one grid step == one image.
#   x2_ref : (1, X_rows, IC)   bf16  flattened padded image (row p = h*Wp + w)
#   w_ref  : (KH*KW, IC, OCp)  bf16  pruned weight, resident (constant index)
#   b_ref  : (1, OCp)          f32   bias
#   o_ref  : (1, M_pad, OCp)   bf16  output rows on the padded-width grid
#   acc_ref: (tm, OCp)         f32   accumulator for one row chunk
# All slice bounds are static Python ints -> no dynamic-offset loads.
# ----------------------------------------------------------------------------
def _conv_implicit_gemm_kernel(x2_ref, w_ref, b_ref, o_ref, acc_ref, *,
                               taps, tm, n_chunks):
    bias = b_ref[...]                                    # (1, OCp), hoisted
    for c in range(n_chunks):                            # static unroll
        m0 = c * tm
        acc_ref[...] = jnp.zeros_like(acc_ref)
        for t, off in enumerate(taps):                   # static unroll, KH*KW taps
            lhs = x2_ref[0, m0 + off:m0 + off + tm, :]   # (tm, IC) static slice
            acc_ref[...] += jnp.dot(lhs, w_ref[t],
                                    preferred_element_type=jnp.float32)  # MXU
        o_ref[0, m0:m0 + tm, :] = (acc_ref[...] + bias).astype(o_ref.dtype)


def sparse_conv2d_forward(x, pruned_w, bias, *, stride=1, padding=0,
                          compute_dtype=jnp.bfloat16, out_dtype=jnp.float32,
                          tm_target=512):
    """conv2d(x, pruned_w, bias) for NCHW x and OIHW pruned_w, via implicit GEMM."""
    N, IC, H, W = x.shape
    OC, IC2, KH, KW = pruned_w.shape
    assert IC == IC2, "input channel mismatch"
    P, s = padding, stride
    Hp, Wp = H + 2 * P, W + 2 * P
    OH1, OW1 = Hp - KH + 1, Wp - KW + 1          # stride-1 output extent
    OH = (Hp - KH) // s + 1
    OW = (Wp - KW) // s + 1

    # ---- operand prep: one cheap pass each, no im2col materialization ----
    xp = jnp.pad(x, ((0, 0), (0, 0), (P, P), (P, P)))
    x2 = xp.transpose(0, 2, 3, 1).astype(compute_dtype).reshape(N, Hp * Wp, IC)

    m_rows = OH1 * Wp                            # rows computed on the padded-width grid
    tm = min(tm_target, _round_up(m_rows, 8))
    m_pad = _round_up(m_rows, tm)
    n_chunks = m_pad // tm
    off_max = (KH - 1) * Wp + (KW - 1)
    x_rows = m_pad + off_max                     # rows the kernel may touch
    x2 = jnp.pad(x2, ((0, 0), (0, x_rows - Hp * Wp), (0, 0)))

    ocp = _round_up(OC, 128)                     # 128-granularity pad only (lane dense)
    w = pruned_w.transpose(2, 3, 1, 0).reshape(KH * KW, IC, OC).astype(compute_dtype)
    w = jnp.pad(w, ((0, 0), (0, 0), (0, ocp - OC)))
    b = jnp.pad(bias.astype(jnp.float32).reshape(1, OC), ((0, 0), (0, ocp - OC)))

    taps = tuple(i * Wp + j for i in range(KH) for j in range(KW))

    # ---- VMEM budget: double-buffered streamed blocks + resident weight + acc.
    # Capped at 48 MiB so the same kernel stays within v7x's 64 MiB/TC.
    elt = jnp.dtype(compute_dtype).itemsize
    need = (2 * x_rows * IC * elt                # image slab (double-buffered)
            + 2 * KH * KW * IC * ocp * elt       # resident pruned weight
            + 2 * ocp * 4                        # bias
            + 2 * m_pad * ocp * elt              # output slab (double-buffered)
            + tm * ocp * 4)                      # f32 accumulator scratch
    vmem_limit = int(min(max(2 * need + (4 << 20), 16 << 20), 48 << 20))
    # TODO(synk): for very large feature maps (whole-image slab > VMEM budget)
    # add an M grid axis with a manual halo DMA instead of the per-image block.

    flops = 2 * N * m_pad * KH * KW * IC * ocp
    bytes_accessed = int(x2.size * elt + w.size * elt + b.size * 4
                         + N * m_pad * ocp * elt)

    kernel = functools.partial(_conv_implicit_gemm_kernel,
                               taps=taps, tm=tm, n_chunks=n_chunks)

    out = pl.pallas_call(
        kernel,
        out_shape=jax.ShapeDtypeStruct((N, m_pad, ocp), compute_dtype),
        grid_spec=pltpu.PrefetchScalarGridSpec(
            num_scalar_prefetch=0,
            grid=(N,),
            in_specs=[
                pl.BlockSpec((1, x_rows, IC), lambda n: (n, 0, 0)),     # streamed image
                pl.BlockSpec((KH * KW, IC, ocp), lambda n: (0, 0, 0)),  # resident weight
                pl.BlockSpec((1, ocp), lambda n: (0, 0)),               # bias
            ],
            out_specs=pl.BlockSpec((1, m_pad, ocp), lambda n: (n, 0, 0)),
            scratch_shapes=[pltpu.VMEM((tm, ocp), jnp.float32)],
        ),
        compiler_params=pltpu.CompilerParams(
            dimension_semantics=("parallel",),
            vmem_limit_bytes=vmem_limit),
        cost_estimate=pl.CostEstimate(flops=flops, transcendentals=0,
                                      bytes_accessed=bytes_accessed),
    )(x2, w, b)

    # ---- epilogue: keep valid columns, NHWC -> NCHW, cast (one fused pass) ----
    out = out[:, :m_rows, :OC].reshape(N, OH1, Wp, OC)[:, :, :OW1, :]
    if s > 1:
        # TODO(synk): strided implicit GEMM (s*s phase decomposition) instead of
        # computing the stride-1 output and subsampling it.
        out = out[:, ::s, ::s, :]
    out = out[:, :OH, :OW, :]
    return out.transpose(0, 3, 1, 2).astype(out_dtype)


# ----------------------------------------------------------------------------
# Glue: percentile threshold, parameter init, module wrapper
# ----------------------------------------------------------------------------
def percentile_threshold(scores_flat, sparsity):
    """Mirror of torch `percentile`: 1-indexed kthvalue with python round()."""
    numel = scores_flat.shape[0]
    q = sparsity * 100.0
    k = 1 + round(0.01 * float(q) * (numel - 1))   # static python arithmetic
    return jnp.sort(scores_flat)[k - 1]


def kaiming_uniform(key, shape, fan_in, scale=1.0):
    gain = math.sqrt(2.0)                          # relu
    bound = gain * math.sqrt(3.0 / fan_in)
    return jax.random.uniform(key, shape, jnp.float32, -bound, bound) * scale


class SparseConv2dPallas:
    """JAX/Pallas re-implementation of SparseConv2d.forward (inference path)."""

    def __init__(self, in_ch, out_ch, kernel_size, stride=1, padding=0,
                 bias=True, sparsity=0.5, init_scale=1.0, init_scale_score=1.0,
                 compute_dtype=jnp.bfloat16, key=None):
        if key is None:
            key = jax.random.PRNGKey(0)
        self.in_ch, self.out_ch = in_ch, out_ch
        self.kernel_size, self.stride, self.padding = kernel_size, stride, padding
        self.sparsity = sparsity
        self.compute_dtype = compute_dtype
        kw_shape = (out_ch, in_ch, kernel_size, kernel_size)
        fan_in = in_ch * kernel_size * kernel_size
        kw_key, ks_key = jax.random.split(key)
        # init_mode = init_mode_mask = 'kaiming_uniform' (deterministic synthetic init)
        self.weight = kaiming_uniform(kw_key, kw_shape, fan_in, init_scale)
        self.weight_score = kaiming_uniform(ks_key, kw_shape, fan_in, init_scale_score)
        self.bias = jnp.zeros((out_ch,), jnp.float32) if bias else None

    def __call__(self, x):
        # --- subnet from score percentile (GetSubnet.forward) ---
        kval = percentile_threshold(self.weight_score.reshape(-1), self.sparsity)
        subnet = jnp.where(self.weight_score < kval, 0.0, 1.0).astype(jnp.float32)
        # Fold the mask into the weight ONCE (loop-invariant); the kernel only
        # ever sees the already-pruned, resident weight matrix.
        pruned_w = self.weight * subnet
        bias = (self.bias if self.bias is not None
                else jnp.zeros((self.out_ch,), jnp.float32))
        return sparse_conv2d_forward(x, pruned_w, bias,
                                     stride=self.stride, padding=self.padding,
                                     compute_dtype=self.compute_dtype,
                                     out_dtype=x.dtype)


# ----------------------------------------------------------------------------
if __name__ == "__main__":
    key = jax.random.PRNGKey(0)
    k_x, k_mod = jax.random.split(key)

    N, C_IN, C_OUT, H, W = 2, 4, 8, 16, 16
    KSIZE, STRIDE, PAD = 3, 1, 1
    x = jax.random.normal(k_x, (N, C_IN, H, W), jnp.float32)

    module = SparseConv2dPallas(C_IN, C_OUT, KSIZE, stride=STRIDE, padding=PAD,
                                bias=True, sparsity=0.5,
                                compute_dtype=jnp.bfloat16, key=k_mod)

    out = jax.block_until_ready(module(x))
    assert out.shape == (N, C_OUT, H, W)

    # --- references with the same pruned weight --------------------------------
    kval = percentile_threshold(module.weight_score.reshape(-1), module.sparsity)
    subnet = jnp.where(module.weight_score < kval, 0.0, 1.0)
    pruned_w = module.weight * subnet
    bias4 = module.bias[None, :, None, None]

    # (a) bf16-matched reference (bf16 operands, f32 accumulation, bf16 result)
    x_q = x.astype(jnp.bfloat16).astype(jnp.float32)
    w_q = pruned_w.astype(jnp.bfloat16).astype(jnp.float32)
    ref_q = lax.conv_general_dilated(
        x_q, w_q, window_strides=(STRIDE, STRIDE),
        padding=[(PAD, PAD), (PAD, PAD)],
        dimension_numbers=("NCHW", "OIHW", "NCHW"),
        precision=lax.Precision.HIGHEST) + bias4
    ref_q = ref_q.astype(jnp.bfloat16).astype(jnp.float32)
    np.testing.assert_allclose(np.asarray(out), np.asarray(ref_q),
                               rtol=2e-2, atol=2e-2)

    # (b) full-f32 reference: end-to-end semantic check at bf16-level tolerance
    ref = lax.conv_general_dilated(
        x, pruned_w, window_strides=(STRIDE, STRIDE),
        padding=[(PAD, PAD), (PAD, PAD)],
        dimension_numbers=("NCHW", "OIHW", "NCHW"),
        precision=lax.Precision.HIGHEST) + bias4
    np.testing.assert_allclose(np.asarray(out), np.asarray(ref),
                               rtol=5e-2, atol=5e-2)

    print("KERNEL_OK")
</pallas_src>

<mosaic_0001>
module attributes {stable_mosaic.version = 11 : i64} {
  func.func @_conv_implicit_gemm_kernel(%arg0: i32, %arg1: memref<1x326x4xbf16, #tpu.memory_space<vmem>>, %arg2: memref<9x4x128xbf16, #tpu.memory_space<vmem>>, %arg3: memref<1x128xf32, #tpu.memory_space<vmem>>, %arg4: memref<1x288x128xbf16, #tpu.memory_space<vmem>>, %arg5: memref<288x128xf32, #tpu.memory_space<vmem>>) attributes {dimension_semantics = [#tpu.dimension_semantics<parallel>], iteration_bounds = array<i64: 2>, scalar_prefetch = 0 : i64, scratch_operands = 1 : i64, tpu.core_type = #tpu.core_type<tc>, window_params = [{transform_indices = @transform_0, window_bounds = array<i64: 1, 326, 4>}, {pipeline_mode = #tpu.pipeline_mode<synchronous>, transform_indices = @transform_1, window_bounds = array<i64: 9, 4, 128>}, {pipeline_mode = #tpu.pipeline_mode<synchronous>, transform_indices = @transform_2, window_bounds = array<i64: 1, 128>}, {transform_indices = @transform_3, window_bounds = array<i64: 1, 288, 128>}]} {
    %c0 = arith.constant 0 : index
    %c0_0 = arith.constant 0 : index
    %0 = vector.load %arg3[%c0, %c0_0] : memref<1x128xf32, #tpu.memory_space<vmem>>, vector<1x128xf32>
    %cst = arith.constant 0.000000e+00 : f32
    %1 = vector.broadcast %cst : f32 to vector<288x128xf32>
    %c0_1 = arith.constant 0 : index
    %c0_2 = arith.constant 0 : index
    %2 = vector.load %arg5[%c0_1, %c0_2] : memref<288x128xf32, #tpu.memory_space<vmem>>, vector<288x128xf32>
    tpu.vector_store %arg5[%c0_1, %c0_2], %1 {strides = array<i32>} : memref<288x128xf32, #tpu.memory_space<vmem>>, vector<288x128xf32>,
    %c0_3 = arith.constant 0 : index
    %c0_4 = arith.constant 0 : index
    %c0_5 = arith.constant 0 : index
    %3 = vector.load %arg1[%c0_3, %c0_4, %c0_5] : memref<1x326x4xbf16, #tpu.memory_space<vmem>>, vector<1x288x4xbf16>
    %4 = vector.shape_cast %3 : vector<1x288x4xbf16> to vector<288x4xbf16>
    %c0_6 = arith.constant 0 : index
    %c0_7 = arith.constant 0 : index
    %5 = vector.load %arg5[%c0_6, %c0_7] : memref<288x128xf32, #tpu.memory_space<vmem>>, vector<288x128xf32>
    %c0_8 = arith.constant 0 : index
    %c0_9 = arith.constant 0 : index
    %c0_10 = arith.constant 0 : index
    %6 = vector.load %arg2[%c0_8, %c0_9, %c0_10] : memref<9x4x128xbf16, #tpu.memory_space<vmem>>, vector<1x4x128xbf16>
    %7 = vector.shape_cast %6 : vector<1x4x128xbf16> to vector<4x128xbf16>
    %cst_11 = arith.constant dense<0.000000e+00> : vector<288x128xf32>
    %8 = tpu.matmul %4, %7, %cst_11 {dimension_numbers = #tpu.dot_dimension_numbers<[1], [0], [0], [1], [0, 0, 1, 1], [], []>} : vector<288x4xbf16>, vector<4x128xbf16>, vector<288x128xf32> -> vector<288x128xf32>
    %9 = arith.addf %5, %8 : vector<288x128xf32>
    %c0_12 = arith.constant 0 : index
    %c0_13 = arith.constant 0 : index
    %10 = vector.load %arg5[%c0_12, %c0_13] : memref<288x128xf32, #tpu.memory_space<vmem>>, vector<288x128xf32>
    tpu.vector_store %arg5[%c0_12, %c0_13], %9 {strides = array<i32>} : memref<288x128xf32, #tpu.memory_space<vmem>>, vector<288x128xf32>,
    %c0_14 = arith.constant 0 : index
    %c1 = arith.constant 1 : index
    %c0_15 = arith.constant 0 : index
    %11 = vector.load %arg1[%c0_14, %c1, %c0_15] : memref<1x326x4xbf16, #tpu.memory_space<vmem>>, vector<1x288x4xbf16>
    %12 = vector.shape_cast %11 : vector<1x288x4xbf16> to vector<288x4xbf16>
    %c0_16 = arith.constant 0 : index
    %c0_17 = arith.constant 0 : index
    %13 = vector.load %arg5[%c0_16, %c0_17] : memref<288x128xf32, #tpu.memory_space<vmem>>, vector<288x128xf32>
    %c1_18 = arith.constant 1 : index
    %c0_19 = arith.constant 0 : index
    %c0_20 = arith.constant 0 : index
    %14 = vector.load %arg2[%c1_18, %c0_19, %c0_20] : memref<9x4x128xbf16, #tpu.memory_space<vmem>>, vector<1x4x128xbf16>
    %15 = vector.shape_cast %14 : vector<1x4x128xbf16> to vector<4x128xbf16>
    %cst_21 = arith.constant dense<0.000000e+00> : vector<288x128xf32>
    %16 = tpu.matmul %12, %15, %cst_21 {dimension_numbers = #tpu.dot_dimension_numbers<[1], [0], [0], [1], [0, 0, 1, 1], [], []>} : vector<288x4xbf16>, vector<4x128xbf16>, vector<288x128xf32> -> vector<288x128xf32>
    %17 = arith.addf %13, %16 : vector<288x128xf32>
    %c0_22 = arith.constant 0 : index
    %c0_23 = arith.constant 0 : index
    %18 = vector.load %arg5[%c0_22, %c0_23] : memref<288x128xf32, #tpu.memory_space<vmem>>, vector<288x128xf32>
    tpu.vector_store %arg5[%c0_22, %c0_23], %17 {strides = array<i32>} : memref<288x128xf32, #tpu.memory_space<vmem>>, vector<288x128xf32>,
    %c0_24 = arith.constant 0 : index
    %c2 = arith.constant 2 : index
    %c0_25 = arith.constant 0 : index
    %19 = vector.load %arg1[%c0_24, %c2, %c0_25] : memref<1x326x4xbf16, #tpu.memory_space<vmem>>, vector<1x288x4xbf16>
    %20 = vector.shape_cast %19 : vector<1x288x4xbf16> to vector<288x4xbf16>
    %c0_26 = arith.constant 0 : index
    %c0_27 = arith.constant 0 : index
    %21 = vector.load %arg5[%c0_26, %c0_27] : memref<288x128xf32, #tpu.memory_space<vmem>>, vector<288x128xf32>
    %c2_28 = arith.constant 2 : index
    %c0_29 = arith.constant 0 : index
    %c0_30 = arith.constant 0 : index
    %22 = vector.load %arg2[%c2_28, %c0_29, %c0_30] : memref<9x4x128xbf16, #tpu.memory_space<vmem>>, vector<1x4x128xbf16>
    %23 = vector.shape_cast %22 : vector<1x4x128xbf16> to vector<4x128xbf16>
    %cst_31 = arith.constant dense<0.000000e+00> : vector<288x128xf32>
    %24 = tpu.matmul %20, %23, %cst_31 {dimension_numbers = #tpu.dot_dimension_numbers<[1], [0], [0], [1], [0, 0, 1, 1], [], []>} : vector<288x4xbf16>, vector<4x128xbf16>, vector<288x128xf32> -> vector<288x128xf32>
    %25 = arith.addf %21, %24 : vector<288x128xf32>
    %c0_32 = arith.constant 0 : index
    %c0_33 = arith.constant 0 : index
    %26 = vector.load %arg5[%c0_32, %c0_33] : memref<288x128xf32, #tpu.memory_space<vmem>>, vector<288x128xf32>
    tpu.vector_store %arg5[%c0_32, %c0_33], %25 {strides = array<i32>} : memref<288x128xf32, #tpu.memory_space<vmem>>, vector<288x128xf32>,
    %c0_34 = arith.constant 0 : index
    %c18 = arith.constant 18 : index
    %c0_35 = arith.constant 0 : index
    %27 = vector.load %arg1[%c0_34, %c18, %c0_35] : memref<1x326x4xbf16, #tpu.memory_space<vmem>>, vector<1x288x4xbf16>
    %28 = vector.shape_cast %27 : vector<1x288x4xbf16> to vector<288x4xbf16>
    %c0_36 = arith.constant 0 : index
    %c0_37 = arith.constant 0 : index
    %29 = vector.load %arg5[%c0_36, %c0_37] : memref<288x128xf32, #tpu.memory_space<vmem>>, vector<288x128xf32>
    %c3 = arith.constant 3 : index
    %c0_38 = arith.constant 0 : index
    %c0_39 = arith.constant 0 : index
    %30 = vector.load %arg2[%c3, %c0_38, %c0_39] : memref<9x4x128xbf16, #tpu.memory_space<vmem>>, vector<1x4x128xbf16>
    %31 = vector.shape_cast %30 : vector<1x4x128xbf16> to vector<4x128xbf16>
    %cst_40 = arith.constant dense<0.000000e+00> : vector<288x128xf32>
    %32 = tpu.matmul %28, %31, %cst_40 {dimension_numbers = #tpu.dot_dimension_numbers<[1], [0], [0], [1], [0, 0, 1, 1], [], []>} : vector<288x4xbf16>, vector<4x128xbf16>, vector<288x128xf32> -> vector<288x128xf32>
    %33 = arith.addf %29, %32 : vector<288x128xf32>
    %c0_41 = arith.constant 0 : index
    %c0_42 = arith.constant 0 : index
    %34 = vector.load %arg5[%c0_41, %c0_42] : memref<288x128xf32, #tpu.memory_space<vmem>>, vector<288x128xf32>
    tpu.vector_store %arg5[%c0_41, %c0_42], %33 {strides = array<i32>} : memref<288x128xf32, #tpu.memory_space<vmem>>, vector<288x128xf32>,
    %c0_43 = arith.constant 0 : index
    %c19 = arith.constant 19 : index
    %c0_44 = arith.constant 0 : index
    %35 = vector.load %arg1[%c0_43, %c19, %c0_44] : memref<1x326x4xbf16, #tpu.memory_space<vmem>>, vector<1x288x4xbf16>
    %36 = vector.shape_cast %35 : vector<1x288x4xbf16> to vector<288x4xbf16>
    %c0_45 = arith.constant 0 : index
    %c0_46 = arith.constant 0 : index
    %37 = vector.load %arg5[%c0_45, %c0_46] : memref<288x128xf32, #tpu.memory_space<vmem>>, vector<288x128xf32>
    %c4 = arith.constant 4 : index
    %c0_47 = arith.constant 0 : index
    %c0_48 = arith.constant 0 : index
    %38 = vector.load %arg2[%c4, %c0_47, %c0_48] : memref<9x4x128xbf16, #tpu.memory_space<vmem>>, vector<1x4x128xbf16>
    %39 = vector.shape_cast %38 : vector<1x4x128xbf16> to vector<4x128xbf16>
    %cst_49 = arith.constant dense<0.000000e+00> : vector<288x128xf32>
    %40 = tpu.matmul %36, %39, %cst_49 {dimension_numbers = #tpu.dot_dimension_numbers<[1], [0], [0], [1], [0, 0, 1, 1], [], []>} : vector<288x4xbf16>, vector<4x128xbf16>, vector<288x128xf32> -> vector<288x128xf32>
    %41 = arith.addf %37, %40 : vector<288x128xf32>
    %c0_50 = arith.constant 0 : index
    %c0_51 = arith.constant 0 : index
    %42 = vector.load %arg5[%c0_50, %c0_51] : memref<288x128xf32, #tpu.memory_space<vmem>>, vector<288x128xf32>
    tpu.vector_store %arg5[%c0_50, %c0_51], %41 {strides = array<i32>} : memref<288x128xf32, #tpu.memory_space<vmem>>, vector<288x128xf32>,
    %c0_52 = arith.constant 0 : index
    %c20 = arith.constant 20 : index
    %c0_53 = arith.constant 0 : index
    %43 = vector.load %arg1[%c0_52, %c20, %c0_53] : memref<1x326x4xbf16, #tpu.memory_space<vmem>>, vector<1x288x4xbf16>
    %44 = vector.shape_cast %43 : vector<1x288x4xbf16> to vector<288x4xbf16>
    %c0_54 = arith.constant 0 : index
    %c0_55 = arith.constant 0 : index
    %45 = vector.load %arg5[%c0_54, %c0_55] : memref<288x128xf32, #tpu.memory_space<vmem>>, vector<288x128xf32>
    %c5 = arith.constant 5 : index
    %c0_56 = arith.constant 0 : index
    %c0_57 = arith.constant 0 : index
    %46 = vector.load %arg2[%c5, %c0_56, %c0_57] : memref<9x4x128xbf16, #tpu.memory_space<vmem>>, vector<1x4x128xbf16>
    %47 = vector.shape_cast %46 : vector<1x4x128xbf16> to vector<4x128xbf16>
    %cst_58 = arith.constant dense<0.000000e+00> : vector<288x128xf32>
    %48 = tpu.matmul %44, %47, %cst_58 {dimension_numbers = #tpu.dot_dimension_numbers<[1], [0], [0], [1], [0, 0, 1, 1], [], []>} : vector<288x4xbf16>, vector<4x128xbf16>, vector<288x128xf32> -> vector<288x128xf32>
    %49 = arith.addf %45, %48 : vector<288x128xf32>
    %c0_59 = arith.constant 0 : index
    %c0_60 = arith.constant 0 : index
    %50 = vector.load %arg5[%c0_59, %c0_60] : memref<288x128xf32, #tpu.memory_space<vmem>>, vector<288x128xf32>
    tpu.vector_store %arg5[%c0_59, %c0_60], %49 {strides = array<i32>} : memref<288x128xf32, #tpu.memory_space<vmem>>, vector<288x128xf32>,
    %c0_61 = arith.constant 0 : index
    %c36 = arith.constant 36 : index
    %c0_62 = arith.constant 0 : index
    %51 = vector.load %arg1[%c0_61, %c36, %c0_62] : memref<1x326x4xbf16, #tpu.memory_space<vmem>>, vector<1x288x4xbf16>
    %52 = vector.shape_cast %51 : vector<1x288x4xbf16> to vector<288x4xbf16>
    %c0_63 = arith.constant 0 : index
    %c0_64 = arith.constant 0 : index
    %53 = vector.load %arg5[%c0_63, %c0_64] : memref<288x128xf32, #tpu.memory_space<vmem>>, vector<288x128xf32>
    %c6 = arith.constant 6 : index
    %c0_65 = arith.constant 0 : index
    %c0_66 = arith.constant 0 : index
    %54 = vector.load %arg2[%c6, %c0_65, %c0_66] : memref<9x4x128xbf16, #tpu.memory_space<vmem>>, vector<1x4x128xbf16>
    %55 = vector.shape_cast %54 : vector<1x4x128xbf16> to vector<4x128xbf16>
    %cst_67 = arith.constant dense<0.000000e+00> : vector<288x128xf32>
    %56 = tpu.matmul %52, %55, %cst_67 {dimension_numbers = #tpu.dot_dimension_numbers<[1], [0], [0], [1], [0, 0, 1, 1], [], []>} : vector<288x4xbf16>, vector<4x128xbf16>, vector<288x128xf32> -> vector<288x128xf32>
    %57 = arith.addf %53, %56 : vector<288x128xf32>
    %c0_68 = arith.constant 0 : index
    %c0_69 = arith.constant 0 : index
    %58 = vector.load %arg5[%c0_68, %c0_69] : memref<288x128xf32, #tpu.memory_space<vmem>>, vector<288x128xf32>
    tpu.vector_store %arg5[%c0_68, %c0_69], %57 {strides = array<i32>} : memref<288x128xf32, #tpu.memory_space<vmem>>, vector<288x128xf32>,
    %c0_70 = arith.constant 0 : index
    %c37 = arith.constant 37 : index
    %c0_71 = arith.constant 0 : index
    %59 = vector.load %arg1[%c0_70, %c37, %c0_71] : memref<1x326x4xbf16, #tpu.memory_space<vmem>>, vector<1x288x4xbf16>
    %60 = vector.shape_cast %59 : vector<1x288x4xbf16> to vector<288x4xbf16>
    %c0_72 = arith.constant 0 : index
    %c0_73 = arith.constant 0 : index
    %61 = vector.load %arg5[%c0_72, %c0_73] : memref<288x128xf32, #tpu.memory_space<vmem>>, vector<288x128xf32>
    %c7 = arith.constant 7 : index
    %c0_74 = arith.constant 0 : index
    %c0_75 = arith.constant 0 : index
    %62 = vector.load %arg2[%c7, %c0_74, %c0_75] : memref<9x4x128xbf16, #tpu.memory_space<vmem>>, vector<1x4x128xbf16>
    %63 = vector.shape_cast %62 : vector<1x4x128xbf16> to vector<4x128xbf16>
    %cst_76 = arith.constant dense<0.000000e+00> : vector<288x128xf32>
    %64 = tpu.matmul %60, %63, %cst_76 {dimension_numbers = #tpu.dot_dimension_numbers<[1], [0], [0], [1], [0, 0, 1, 1], [], []>} : vector<288x4xbf16>, vector<4x128xbf16>, vector<288x128xf32> -> vector<288x128xf32>
    %65 = arith.addf %61, %64 : vector<288x128xf32>
    %c0_77 = arith.constant 0 : index
    %c0_78 = arith.constant 0 : index
    %66 = vector.load %arg5[%c0_77, %c0_78] : memref<288x128xf32, #tpu.memory_space<vmem>>, vector<288x128xf32>
    tpu.vector_store %arg5[%c0_77, %c0_78], %65 {strides = array<i32>} : memref<288x128xf32, #tpu.memory_space<vmem>>, vector<288x128xf32>,
    %c0_79 = arith.constant 0 : index
    %c38 = arith.constant 38 : index
    %c0_80 = arith.constant 0 : index
    %67 = vector.load %arg1[%c0_79, %c38, %c0_80] : memref<1x326x4xbf16, #tpu.memory_space<vmem>>, vector<1x288x4xbf16>
    %68 = vector.shape_cast %67 : vector<1x288x4xbf16> to vector<288x4xbf16>
    %c0_81 = arith.constant 0 : index
    %c0_82 = arith.constant 0 : index
    %69 = vector.load %arg5[%c0_81, %c0_82] : memref<288x128xf32, #tpu.memory_space<vmem>>, vector<288x128xf32>
    %c8 = arith.constant 8 : index
    %c0_83 = arith.constant 0 : index
    %c0_84 = arith.constant 0 : index
    %70 = vector.load %arg2[%c8, %c0_83, %c0_84] : memref<9x4x128xbf16, #tpu.memory_space<vmem>>, vector<1x4x128xbf16>
    %71 = vector.shape_cast %70 : vector<1x4x128xbf16> to vector<4x128xbf16>
    %cst_85 = arith.constant dense<0.000000e+00> : vector<288x128xf32>
    %72 = tpu.matmul %68, %71, %cst_85 {dimension_numbers = #tpu.dot_dimension_numbers<[1], [0], [0], [1], [0, 0, 1, 1], [], []>} : vector<288x4xbf16>, vector<4x128xbf16>, vector<288x128xf32> -> vector<288x128xf32>
    %73 = arith.addf %69, %72 : vector<288x128xf32>
    %c0_86 = arith.constant 0 : index
    %c0_87 = arith.constant 0 : index
    %74 = vector.load %arg5[%c0_86, %c0_87] : memref<288x128xf32, #tpu.memory_space<vmem>>, vector<288x128xf32>
    tpu.vector_store %arg5[%c0_86, %c0_87], %73 {strides = array<i32>} : memref<288x128xf32, #tpu.memory_space<vmem>>, vector<288x128xf32>,
    %c0_88 = arith.constant 0 : index
    %c0_89 = arith.constant 0 : index
    %75 = vector.load %arg5[%c0_88, %c0_89] : memref<288x128xf32, #tpu.memory_space<vmem>>, vector<288x128xf32>
    %76 = vector.broadcast %0 : vector<1x128xf32> to vector<288x128xf32>
    %77 = arith.addf %75, %76 : vector<288x128xf32>
    %78 = arith.truncf %77 : vector<288x128xf32> to vector<288x128xbf16>
    %c0_90 = arith.constant 0 : index
    %c0_91 = arith.constant 0 : index
    %c0_92 = arith.constant 0 : index
    %79 = vector.load %arg4[%c0_90, %c0_91, %c0_92] : memref<1x288x128xbf16, #tpu.memory_space<vmem>>, vector<1x288x128xbf16>
    %80 = vector.shape_cast %79 : vector<1x288x128xbf16> to vector<288x128xbf16>
    %81 = vector.shape_cast %78 : vector<288x128xbf16> to vector<1x288x128xbf16>
    tpu.vector_store %arg4[%c0_90, %c0_91, %c0_92], %81 {strides = array<i32>} : memref<1x288x128xbf16, #tpu.memory_space<vmem>>, vector<1x288x128xbf16>,
    return
  }
  func.func @transform_0(%arg0: i32) -> (i32, i32, i32) {
    %c0_i32 = arith.constant 0 : i32
    %c0_i32_0 = arith.constant 0 : i32
    %c0_i32_1 = arith.constant 0 : i32
    return %arg0, %c0_i32, %c0_i32_0 : i32, i32, i32
  }
  func.func @transform_1(%arg0: i32) -> (i32, i32, i32) {
    %c0_i32 = arith.constant 0 : i32
    %c0_i32_0 = arith.constant 0 : i32
    %c0_i32_1 = arith.constant 0 : i32
    %c0_i32_2 = arith.constant 0 : i32
    return %c0_i32, %c0_i32_0, %c0_i32_1 : i32, i32, i32
  }
  func.func @transform_2(%arg0: i32) -> (i32, i32) {
    %c0_i32 = arith.constant 0 : i32
    %c0_i32_0 = arith.constant 0 : i32
    %c0_i32_1 = arith.constant 0 : i32
    return %c0_i32, %c0_i32_0 : i32, i32
  }
  func.func @transform_3(%arg0: i32) -> (i32, i32, i32) {
    %c0_i32 = arith.constant 0 : i32
    %c0_i32_0 = arith.constant 0 : i32
    %c0_i32_1 = arith.constant 0 : i32
    return %arg0, %c0_i32, %c0_i32_0 : i32, i32, i32
  }
}

</mosaic_0001>

<bundles_post_ra>
// kernel: tpu_custom_call.1
= control target key start
LH: loop header
LB: loop body
LE: loop exit
PB: predicated region body
PF: predicated region fallthrough
CT: control target
= control target key end

     0   :  { %8 = vsyncpa [#allocation4], 0  ;;  %s7874_s0 = inlined_call_operand.vmem [shape: bf16[2,326,4], index: 0, kind: input, shape index: {}]   ;;  %s7875_s1 = inlined_call_operand.vmem [shape: bf16[9,4,128], index: 1, kind: input, shape index: {}]   ;;  %s7876_s2 = inlined_call_operand.vmem [shape: f32[1,128], index: 2, kind: input, shape index: {}]   ;;  %s7877_s3 = inlined_call_operand.hbm [shape: bf16[2,288,128], index: 3, kind: output, shape index: {}]  }
   0x1   :  { %10 = vsyncpa [#allocation4 + $0x1], 0  ;;  %s7126_s12 = smov 0   ;;  %s7128_s13 = smov 0  }
   0x2   :  { %s7130_s14 = smov 0   ;;  %s7132_s15 = smov 0  }
   0x3 LB: > { %s7147_s16 = sadd.s32 4294967295, %s7101_s15   ;;  %s5483_s17 = sadd.s32 4294967294, %s7101_s15   ;;  %s7101_s15 = sphi %s7132_s15, %s7883_s15   ;;  %s7097_s14 = sphi %s7130_s14, %s7882_s14   ;;  %s7093_s13 = sphi %s7128_s13, %s7881_s13   ;;  %s7089_s12 = sphi %s7126_s12, %s7880_s12  }
   0x4   : > { %s7151_s18 = sadd.s32 1, %s7101_s15   ;;  %s91_s19 = sadd.s32 1, %s7097_s14 }
   0x5   : > { %s88_s20 = ssub.s32 %s7101_s15, %s7151_s18  ;;  %p101_p0 = scmp.ne.s32.totalorder %s7097_s14, %s7093_s13 }
   0x6   : > { %p89_p1 = scmp.eq.s32.totalorder %s88_s20, 0  ;;  %p102_p2 = scmp.eq.s32.totalorder %s7147_s16, 1 }
   0x7   : > { %p107_p3 = scmp.ne.s32.totalorder %s7093_s13, %s7089_s12  ;;  %p108_p4 = scmp.eq.s32.totalorder %s5483_s17, 1 }
   0x8   : > { %s7162_s21 = scalar_select %p89_p1, %s7097_s14, %s91_s19  }
   0x9   : > { %p7164_p5 = por %p102_p2, %p101_p0  ;;  %p7168_p6 = por %p108_p4, %p107_p3 }
   0xa   : > { %p5486_p7 = scmp.ge.s32.totalorder %s7101_s15, 1  ;;  %p140_p8 = scmp.lt.s32.totalorder %s7101_s15, 3 }
   0xc   : > { %p141_p9 = pnand %p5486_p7, %p140_p8 }
   0xd   : > { %v279_v0 = vld [vmem:[%s7875_s1] sm:$0x3] (!%p141_p9)  ;;  %vm425_vm0 = vcmask (!%p141_p9), 1041408   ;;  %p164_p10 = scmp.lt.s32.totalorder (!%p141_p9), %s7147_s16, 1  ;;  %v5638_v2 = vld [vmem:[%s7875_s1 + $0x8] sm:$0x3] (!%p141_p9) }
   0xe   : > { %144 = sbr.rel (%p141_p9) target bundleno = 592 (0x250), region = 32  ;;  %6814 = vmatprep.subr.msk.bf16.mxu1 (!%p141_p9), %vm425_vm0, %v279_v0  ;;  %v427_v1 = vsel (!%p141_p9), %vm425_vm0, %v279_v0, 0  ;;  %6818 = vmatprep.subr.msk.bf16.mxu0 (!%p141_p9), %vm425_vm0, %v5638_v2  ;;  %v7186_v3 = vsel (!%p141_p9), %vm425_vm0, %v5638_v2, 0  ;;  %v5676_v4 = vld [vmem:[%s7875_s1 + $0xa] sm:$0x3] (!%p141_p9)  ;;  %vm370_vm1 = vcmask (!%p141_p9), 31744  }
   0xf   : > { %6183 = vmatpush3.bf16.msra.mxu1 (!%p141_p9), %v427_v1  ;;  %v5524_v5 = vld [vmem:[%s7875_s1 + $0x2] sm:$0x3] (!%p141_p9)  ;;  %6335 = vmatpush3.bf16.msra.mxu0 (!%p141_p9), %v7186_v3  ;;  %vm2492_vm2 = vsmask.f32 (!%p141_p9), 6400  ;;  %v7206_v7 = vld [vmem:[%s7875_s1 + $0x4] sm:$0x3] (!%p141_p9) }
  0x10   : > { %6815 = vmatprep.subr.msk.bf16.mxu1 (!%p141_p9), %vm425_vm0, %v5524_v5  ;;  %6820 = vmatprep.subr.msk.bf16.mxu0 (!%p141_p9), %vm425_vm0, %v5676_v4  ;;  %v1050_v9 = vsel (!%p141_p9), %vm425_vm0, %v5524_v5, 0  ;;  %v3230_v18 = vsel (!%p141_p9), %vm425_vm0, %v5676_v4, 0  ;;  %v7231_v40 = vld [vmem:[%s7875_s1 + $0xc] sm:$0x3] (!%p141_p9)  ;;  %vm3137_vm3 = vcmask (!%p141_p9), 1045504   ;;  %vm1469_vm5 = vcmask (!%p141_p9), 1046528  }
  0x11   : > { %vm846_vm4 = vsmask.f32 (!%p141_p9), 7424  ;;  %vm4160_vm6 = vsmask.f32 (!%p141_p9), 5376  ;;  %vm4805_vm7 = vcmask (!%p141_p9), 1044480   ;;  %s161_s4 = sand.u32 (!%p141_p9), 1, %s7093_s13  }
  0x12   : > { %s6824_s7 = smul.u32 (!%p141_p9), 144, %s161_s4  ;;  %s7103_s24 = smov (!%p141_p9), [#allocation3]  }
  0x13   : > { %s7043_s25 = sshll.u32 (!%p141_p9), %s7103_s24, 4  ;;  %s7044_s25 = int_to_ptr.vmem [resolvable:$false] %s7043_s25 }
  0x14   : > { %s7762_s8 = scalar_lea.vmem (!%p141_p9), [#allocation3], %s6824_s7  ;;  %s7045_s26 = scalar_lea.vmem (!%p141_p9), %s7044_s25, 4608 }
  0x15   : > { %s165_s28 = scalar_select %p164_p10, %s7147_s16, 1 }
  0x16   : > { %s5421_s10 = sshll.u32 %s7762_s8, 4  ;;  %s7827_s10 = int_to_ptr.vmem [resolvable:$true] %s5421_s10 }
  0x17   : > { %s6825_s6 = smul.u32 164, %s165_s28  ;;  %s7039_s20 = scalar_lea.vmem %s7827_s10, 2304 }
  0x18   : > { %p7040_p11 = scmp.ne.s32.totalorder %s7827_s10, %s7039_s20  ;;  %p7046_p0 = scmp.lt.s32.totalorder %s7827_s10, %s7044_s25 }
  0x19   : > { %s7200_s9 = scalar_lea.vmem %s7874_s0, %s6825_s6  ;;  %p7047_p1 = scmp.lt.s32.totalorder %s7045_s26, %s7039_s20 }
  0x1a   : > { %v6868_v6 = vld [vmem:[%s7200_s9] sm:$0xff]   ;;  %v6869_v8 = vld [vmem:[%s7200_s9 + $0x8] sm:$0xff]   ;;  %v6871_v11 = vld [vmem:[%s7200_s9 + $0x10] sm:$0xff]   ;;  %p7041_p12 = pnand %p7040_p11, %p7164_p5 }
  0x1b   : > { %6184 = vmatprep.mubr.msk.bf16.mxu1 %vm370_vm1, %v6868_v6  ;;  %v6870_v10 = vld [vmem:[%s7200_s9 + $0x8] sm:$0xfe]   ;;  %v6872_v12 = vld [vmem:[%s7200_s9 + $0x10] sm:$0xff]   ;;  %v2502_v15 = vshrl.u32 %v6871_v11, 16  ;;  %v2505_v16 = vshll.u32 %v6871_v11, 16  ;;  %v6873_v17 = vld [vmem:[%s7200_s9 + $0x18] sm:$0xff]   ;;  %p7048_p2 = por %p7047_p1, %p7046_p0 }
  0x1c   : > { %6185 = vmatmul.mubr.msk.bf16.vlgmr.msra.gmra.mrb[0].mxu1 %vm370_vm1, %v6869_v8  ;;  %v2494_v13 = vshrl.u32 %v6870_v10, 16  ;;  %v2497_v14 = vshll.u32 %v6870_v10, 16  ;;  %v2511_v23 = vshrl.u32 %v6873_v17, 16  ;;  %v2514_v24 = vshll.u32 %v6873_v17, 16  ;;  %v6874_v25 = vld [vmem:[%s7200_s9 + $0x18] sm:$0xff]   ;;  %v6875_v26 = vld [vmem:[%s7200_s9 + $0x20] sm:$0xff]   ;;  %p7042_p13 = pneg %p7041_p12 }
  0x1d   : > { %6221 = vmatpush3.bf16.msra.mxu1 %v1050_v9  ;;  %6188 = vmatprep.mubr.msk.bf16.mxu1 %vm370_vm1, %v6872_v12  ;;  %v2504_v21 = vrot.slane %v2502_v15, 1  ;;  %v2507_v22 = vrot.slane %v2505_v16, 2  ;;  %v2520_v31 = vshrl.u32 %v6875_v26, 16  ;;  %v2523_v32 = vshll.u32 %v6875_v26, 16  ;;  %v6876_v33 = vld [vmem:[%s7200_s9 + $0x20] sm:$0xff]   ;;  %v6877_v34 = vld [vmem:[%s7200_s9 + $0x28] sm:$0xff]  }
  0x1e   : > { %6816 = vmatprep.subr.msk.bf16.mxu1 %vm425_vm0, %v7206_v7  ;;  %v2496_v19 = vrot.slane %v2494_v13, 1  ;;  %v2499_v20 = vrot.slane %v2497_v14, 2  ;;  %v2513_v29 = vrot.slane %v2511_v23, 1  ;;  %v2516_v30 = vrot.slane %v2514_v24, 2  ;;  %v6878_v42 = vld [vmem:[%s7200_s9 + $0x28] sm:$0xff]   ;;  %v6879_v43 = vld [vmem:[%s7200_s9 + $0x30] sm:$0xff]   ;;  %p7049_p3 = pnand %p7048_p2, %p7042_p13 }
  0x1f   : > { %v2508_v28 = vor.u32 %v2507_v22, %v2504_v21  ;;  %v2522_v37 = vrot.slane %v2520_v31, 1  ;;  %v2525_v38 = vrot.slane %v2523_v32, 2  ;;  %v2529_v39 = vshrl.u32 %v6877_v34, 16  ;;  %v6880_v47 = vld [vmem:[%s7200_s9 + $0x30] sm:$0xff]   ;;  %v6881_v51 = vld [vmem:[%s7200_s9 + $0x38] sm:$0xff]   ;;  %v6883_v58 = vld [vmem:[%s7200_s9 + $0x40] sm:$0xff]  }
  0x20   : > { %v2500_v27 = vor.u32 %v2499_v20, %v2496_v19  ;;  %v2517_v36 = vor.u32 %v2516_v30, %v2513_v29  ;;  %v2532_v41 = vshll.u32 %v6877_v34, 16  ;;  %v2538_v49 = vshrl.u32 %v6879_v43, 16  ;;  %v6885_v1 = vld [vmem:[%s7200_s9 + $0x48] sm:$0xff]   ;;  %v6882_v4 = vld [vmem:[%s7200_s9 + $0x38] sm:$0xff]   ;;  %v6887_v8 = vld [vmem:[%s7200_s9 + $0x50] sm:$0xff]  }
  0x21   : > { %v2526_v45 = vor.u32 %v2525_v38, %v2522_v37  ;;  %v2531_v46 = vrot.slane %v2529_v39, 1  ;;  %v2541_v50 = vshll.u32 %v6879_v43, 16  ;;  %v2547_v56 = vshrl.u32 %v6881_v51, 16  ;;  %v6884_v12 = vld [vmem:[%s7200_s9 + $0x40] sm:$0xff]   ;;  %v6886_v23 = vld [vmem:[%s7200_s9 + $0x48] sm:$0xff]   ;;  %v6888_v24 = vld [vmem:[%s7200_s9 + $0x50] sm:$0xff]  }
  0x22   : > { %v2509_v35 = vsel %vm2492_vm2, %v2500_v27, %v2508_v28  ;;  %v2518_v44 = vsel %vm2492_vm2, %v2508_v28, %v2517_v36  ;;  %v2534_v48 = vrot.slane %v2532_v41, 2  ;;  %v2540_v54 = vrot.slane %v2538_v49, 1  ;;  %v6892_v29 = vld [vmem:[%s7200_s9 + $0x10] sm:$0xff]   ;;  %v6891_v34 = vld [vmem:[%s7200_s9 + $0x8] sm:$0xfc]   ;;  %v6893_v37 = vld [vmem:[%s7200_s9 + $0x60] sm:$0xff]  }
  0x23   : > { %6336 = vmatprep.mubr.msk.bf16.mxu0 %vm370_vm1, %v2509_v35  ;;  %v2527_v52 = vsel %vm2492_vm2, %v2517_v36, %v2526_v45  ;;  %v2543_v55 = vrot.slane %v2541_v50, 2  ;;  %v2550_v57 = vshll.u32 %v6881_v51, 16  ;;  %v2549_v60 = vrot.slane %v2547_v56, 1  ;;  %v6890_v35 = vld [vmem:[%s7200_s9 + $0x58] sm:$0xff]   ;;  %v6905_v49 = vld [vmem:[%s7200_s9] sm:$0xff]   ;;  %v6898_v50 = vld [vmem:[%s7200_s9 + $0x28] sm:$0xff]  }
  0x24   : > { %6189 = vmatmul.mubr.msk.bf16.gmra.mrb[4].mxu1 %vm370_vm1, %v6874_v25  ;;  %6337 = vmatmul.mubr.msk.bf16.vlgmr.msra.gmra.mrb[0].mxu0 %vm370_vm1, %v2518_v44  ;;  %v2535_v53 = vor.u32 %v2534_v48, %v2531_v46  ;;  %v2556_v63 = vshrl.u32 %v6883_v58, 16  ;;  %v2559_v0 = vshll.u32 %v6883_v58, 16  ;;  %v2565_v9 = vshrl.u32 %v6885_v1, 16  ;;  %v6896_v44 = vld [vmem:[%s7200_s9 + $0x20] sm:$0xff]  }
  0x25   : > { %6192 = vmatprep.mubr.msk.bf16.mxu1 %vm370_vm1, %v6876_v33  ;;  %6373 = vmatpush3.bf16.msra.mxu0 %v3230_v18  ;;  %v2544_v59 = vor.u32 %v2543_v55, %v2540_v54  ;;  %v2552_v62 = vrot.slane %v2550_v57, 2  ;;  %v2568_v10 = vshll.u32 %v6885_v1, 16  ;;  %v2574_v14 = vshrl.u32 %v6887_v8, 16  ;;  %v6889_v18 = vld [vmem:[%s7200_s9 + $0x58] sm:$0xff]   ;;  %v6900_v55 = vld [vmem:[%s7200_s9 + $0x30] sm:$0xff]  }
  0x26   : > { %6340 = vmatprep.mubr.msk.bf16.mxu0 %vm370_vm1, %v2527_v52  ;;  %6821 = vmatprep.subr.msk.bf16.mxu0 %vm425_vm0, %v7231_v40  ;;  %v2536_v61 = vsel %vm2492_vm2, %v2526_v45, %v2535_v53  ;;  %v2558_v5 = vrot.slane %v2556_v63, 1  ;;  %v2561_v6 = vrot.slane %v2559_v0, 2  ;;  %v2577_v15 = vshll.u32 %v6887_v8, 16  ;;  %v6895_v45 = vld [vmem:[%s7200_s9 + $0x68] sm:$0xff]   ;;  %v6902_v0 = vld [vmem:[%s7200_s9 + $0x38] sm:$0xff]   ;;  %v6908_v1 = vld [vmem:[%s7200_s9 + $0x10] sm:$0xff]  }
  0x27   : > { %v2545_v2 = vsel %vm2492_vm2, %v2535_v53, %v2544_v59  ;;  %v2553_v11 = vor.u32 %v2552_v62, %v2549_v60  ;;  %v2567_v16 = vrot.slane %v2565_v9, 1  ;;  %v2570_v17 = vrot.slane %v2568_v10, 2  ;;  %v6906_v53 = vld [vmem:[%s7200_s9 + $0x8] sm:$0xff]  }
  0x28   : > { %v2562_v13 = vor.u32 %v2561_v6, %v2558_v5  ;;  %v2576_v21 = vrot.slane %v2574_v14, 1  ;;  %v2579_v22 = vrot.slane %v2577_v15, 2  ;;  %v2583_v26 = vshrl.u32 %v6889_v18, 16  ;;  %v7299_v57 = vld [vmem:[%s7875_s1 + $0xe] sm:$0x3]  ;;  %v6910_v6 = vld [vmem:[%s7200_s9 + $0x18] sm:$0xff]  }
  0x29   : > { %v2554_v19 = vsel %vm2492_vm2, %v2544_v59, %v2553_v11  ;;  %v2571_v25 = vor.u32 %v2570_v17, %v2567_v16  ;;  %v2586_v27 = vshll.u32 %v6889_v18, 16  ;;  %v3138_v38 = vrot.slane %v6891_v34, 2  ;;  %v6899_v59 = vld [vmem:[%s7200_s9 + $0x78] sm:$0xff]   ;;  %v6903_v10 = vld [vmem:[%s7200_s9 + $0x88] sm:$0xff]  }
  0x2a   : > { %v2563_v20 = vsel %vm2492_vm2, %v2553_v11, %v2562_v13  ;;  %v2580_v28 = vor.u32 %v2579_v22, %v2576_v21  ;;  %v2585_v31 = vrot.slane %v2583_v26, 1  ;;  %v3139_v39 = vrot.slane %v6892_v29, 2  ;;  %v6907_v18 = vld [vmem:[%s7200_s9 + $0x48] sm:$0xff]  }
  0x2b   : > { %v2572_v30 = vsel %vm2492_vm2, %v2562_v13, %v2571_v25  ;;  %v2588_v32 = vrot.slane %v2586_v27, 2  ;;  %v3143_v48 = vrot.slane %v6896_v44, 2  ;;  %v3741_v52 = vsel %vm425_vm0, %v7231_v40, 0  ;;  %v6901_v40 = vld [vmem:[%s7200_s9 + $0x80] sm:$0xff]   ;;  %v6914_v27 = vld [vmem:[%s7200_s9 + $0x28] sm:$0xff]   ;;  %v6918_v44 = vld [vmem:[%s7200_s9 + $0x38] sm:$0xff]  }
  0x2c   : > { %6193 = vmatmul.mubr.msk.bf16.gmra.mrb[8].mxu1 %vm370_vm1, %v6878_v42  ;;  %6341 = vmatmul.mubr.msk.bf16.gmra.mrb[4].mxu0 %vm370_vm1, %v2536_v61  ;;  %v2581_v33 = vsel %vm2492_vm2, %v2571_v25, %v2580_v28  ;;  %v6894_v42 = vld [vmem:[%s7200_s9 + $0x18] sm:$0xff]   ;;  %v3140_v43 = vsel %vm3137_vm3, %v3138_v38, %v3139_v39  ;;  %v850_v56 = vshll.u32 %v6905_v49, 16  ;;  %v3145_v58 = vrot.slane %v6898_v50, 2 }
  0x2d   : > { %6196 = vmatprep.mubr.msk.bf16.mxu1 %vm370_vm1, %v6880_v47  ;;  %6344 = vmatprep.mubr.msk.bf16.mxu0 %vm370_vm1, %v2545_v2  ;;  %v7272_v36 = vor.u32 %v2588_v32, %v2585_v31  ;;  %v3141_v46 = vrot.slane %v6894_v42, 2  ;;  %v6897_v47 = vld [vmem:[%s7200_s9 + $0x70] sm:$0xff]   ;;  %v855_v60 = vshll.u32 %v6906_v53, 16  ;;  %v3147_v61 = vrot.slane %v6900_v55, 2  ;;  %v6911_v38 = vld [vmem:[%s7200_s9 + $0x58] sm:$0xff]  }
  0x2e   : > { %v848_v62 = vshrl.u32 %v6905_v49, 16  ;;  %v852_v63 = vrot.slane %v850_v56, 1  ;;  %v3146_v2 = vsel %vm3137_vm3, %v3143_v48, %v3145_v58  ;;  %v863_v11 = vshll.u32 %v6908_v1, 16  ;;  %v6915_v56 = vld [vmem:[%s7200_s9 + $0x68] sm:$0xff]  }
  0x2f   : > { %v2590_v41 = vsel %vm2492_vm2, %v2580_v28, %v7272_v36  ;;  %v3142_v51 = vsel %vm3137_vm3, %v3139_v39, %v3141_v46  ;;  %v3144_v54 = vsel %vm3137_vm3, %v3141_v46, %v3143_v48  ;;  %v857_v5 = vrot.slane %v855_v60, 1 }
  0x30   : > { %v3148_v8 = vsel %vm3137_vm3, %v3145_v58, %v3147_v61  ;;  %v853_v9 = vor.u32 %v852_v63, %v848_v62  ;;  %v859_v13 = vshrl.u32 %v6906_v53, 16  ;;  %v867_v16 = vshrl.u32 %v6908_v1, 16  ;;  %v6922_v1 = vld [vmem:[%s7200_s9 + $0x48] sm:$0xff]  }
  0x31   : > { %v871_v17 = vshll.u32 %v6910_v6, 16  ;;  %v1562_v28 = vsel %vm425_vm0, %v7206_v7, 0  ;;  %v3153_v29 = vrot.slane %v6907_v18, 2  ;;  %v6913_v7 = vld [vmem:[%s7200_s9 + $0x60] sm:$0xff]   ;;  %v3157_v48 = vrot.slane %v6911_v38, 2 }
  0x32   : > { %v858_v15 = vsel %vm846_vm4, %v853_v9, %v857_v5  ;;  %v861_v22 = vor.u32 %v859_v13, %v857_v5  ;;  %v3159_v49 = vrot.slane %v6913_v7, 2 }
  0x33   : > { %v873_v26 = vrot.slane %v871_v17, 1  ;;  %v6921_v17 = vld [vmem:[%s7200_s9 + $0x80] sm:$0xff]  }
  0x34   : > { %6197 = vmatmul.mubr.msk.bf16.gmra.mrb[12].mxu1 %vm370_vm1, %v6882_v4  ;;  %6345 = vmatmul.mubr.msk.bf16.gmra.mrb[8].mxu0 %vm370_vm1, %v2554_v19  ;;  %v6904_v4 = vld [vmem:[%s7200_s9 + $0x40] sm:$0xff]   ;;  %v865_v19 = vrot.slane %v863_v11, 1  ;;  %v3160_v62 = vsel %vm3137_vm3, %v3157_v48, %v3159_v49  ;;  %v919_v11 = vshll.u32 %v6922_v1, 16 }
  0x35   : > { %6200 = vmatprep.mubr.msk.bf16.mxu1 %vm370_vm1, %v6884_v12  ;;  %6348 = vmatprep.mubr.msk.bf16.mxu0 %vm370_vm1, %v2563_v20  ;;  %v3149_v12 = vrot.slane %v6902_v0, 2  ;;  %v3151_v14 = vrot.slane %v6904_v4, 2  ;;  %v6912_v20 = vld [vmem:[%s7200_s9 + $0x20] sm:$0xff]  }
  0x36   : > { %v869_v25 = vor.u32 %v867_v16, %v865_v19  ;;  %v866_v31 = vsel %vm846_vm4, %v861_v22, %v865_v19  ;;  %v7368_v22 = vld [vmem:[%s7875_s1 + $0x6] sm:$0x3] }
  0x37   : > { %v3150_v21 = vsel %vm3137_vm3, %v3147_v61, %v3149_v12  ;;  %v3154_v42 = vsel %vm3137_vm3, %v3151_v14, %v3153_v29  ;;  %v6917_v61 = vld [vmem:[%s7200_s9 + $0x70] sm:$0xff]  }
  0x38   : > { %v874_v34 = vsel %vm846_vm4, %v869_v25, %v873_v26 }
  0x3c   : > { %6201 = vmatmul.mubr.msk.bf16.gmra.mrb[16].mxu1 %vm370_vm1, %v6886_v23  ;;  %6349 = vmatmul.mubr.msk.bf16.gmra.mrb[12].mxu0 %vm370_vm1, %v2572_v30  ;;  %v6909_v23 = vld [vmem:[%s7200_s9 + $0x50] sm:$0xff]   ;;  %v879_v30 = vshll.u32 %v6912_v20, 16 }
  0x3d   : > { %6204 = vmatprep.mubr.msk.bf16.mxu1 %vm370_vm1, %v6888_v24  ;;  %6352 = vmatprep.mubr.msk.bf16.mxu0 %vm370_vm1, %v2581_v33  ;;  %v3152_v24 = vsel %vm3137_vm3, %v3149_v12, %v3151_v14  ;;  %v3155_v32 = vrot.slane %v6909_v23, 2  ;;  %v875_v33 = vshrl.u32 %v6910_v6, 16  ;;  %v3163_v6 = vrot.slane %v6917_v61, 2  ;;  %v6919_v12 = vld [vmem:[%s7200_s9 + $0x78] sm:$0xff]   ;;  %v6924_v14 = vld [vmem:[%s7200_s9 + $0x50] sm:$0xff]  }
  0x3e   : > { %v881_v39 = vrot.slane %v879_v30, 1  ;;  %v927_v23 = vshll.u32 %v6924_v14, 16 }
  0x44   : > { %6205 = vmatmul.mubr.msk.bf16.gmra.mrb[20].mxu1 %vm370_vm1, %v6890_v35  ;;  %6353 = vmatmul.mubr.msk.bf16.gmra.mrb[16].mxu0 %vm370_vm1, %v2590_v41  ;;  %v883_v35 = vshrl.u32 %v6912_v20, 16  ;;  %v6916_v41 = vld [vmem:[%s7200_s9 + $0x30] sm:$0xff]   ;;  %v921_v20 = vrot.slane %v919_v11, 1  ;;  %v6932_v11 = vld [vmem:[%s7200_s9 + $0x20] sm:$0xff]  }
  0x45   : > { %6208 = vmatprep.mubr.msk.bf16.mxu1 %vm370_vm1, %v6893_v37  ;;  %6374 = vmatprep.mubr.msk.bf16.mxu0 %vm370_vm1, %v3140_v43  ;;  %v887_v37 = vshll.u32 %v6914_v27, 16  ;;  %v877_v43 = vor.u32 %v875_v33, %v873_v26  ;;  %v895_v50 = vshll.u32 %v6916_v41, 16  ;;  %v899_v53 = vshrl.u32 %v6916_v41, 16  ;;  %v6928_v33 = vld [vmem:[%s7200_s9 + $0x60] sm:$0xff]   ;;  %v6931_v41 = vld [vmem:[%s7200_s9 + $0x68] sm:$0xff]  }
  0x46   : > { %v885_v46 = vor.u32 %v883_v35, %v881_v39  ;;  %v3167_v26 = vrot.slane %v6921_v17, 2  ;;  %v6939_v17 = vld [vmem:[%s7200_s9 + $0x88] sm:$0xff]  }
  0x47   : > { %v897_v58 = vrot.slane %v895_v50, 1  ;;  %v951_v50 = vshll.u32 %v6931_v41, 16 }
  0x49   : > { %v901_v63 = vor.u32 %v899_v53, %v897_v58 }
  0x4c   : > { %6209 = vmatmul.mubr.msk.bf16.gmra.mrb[24].mxu1 %vm370_vm1, %v6895_v45  ;;  %6375 = vmatmul.mubr.msk.bf16.vlgmr.msra.gmra.mrb[0].mxu0 %vm370_vm1, %v3142_v51  ;;  %v3156_v45 = vsel %vm3137_vm3, %v3153_v29, %v3155_v32  ;;  %v882_v51 = vsel %vm846_vm4, %v877_v43, %v881_v39  ;;  %v931_v29 = vshrl.u32 %v6924_v14, 16  ;;  %v943_v43 = vshll.u32 %v6928_v33, 16 }
  0x4d   : > { %6212 = vmatprep.mubr.msk.bf16.mxu1 %vm370_vm1, %v6897_v47  ;;  %6411 = vmatpush3.bf16.msra.mxu0 %v3741_v52  ;;  %v889_v47 = vrot.slane %v887_v37, 1  ;;  %v891_v52 = vshrl.u32 %v6914_v27, 16  ;;  %v923_v27 = vshrl.u32 %v6922_v1, 16  ;;  %v6925_v37 = vld [vmem:[%s7200_s9 + $0x90] sm:$0xff]   ;;  %v955_v1 = vshrl.u32 %v6931_v41, 16 }
  0x4e   : > { %6378 = vmatprep.mubr.msk.bf16.mxu0 %vm370_vm1, %v3144_v54  ;;  %6822 = vmatprep.subr.msk.bf16.mxu0 %vm425_vm0, %v7299_v57  ;;  %v903_v54 = vshll.u32 %v6918_v44, 16 }
  0x4f   : > { %v890_v55 = vsel %vm846_vm4, %v885_v46, %v889_v47  ;;  %v893_v60 = vor.u32 %v891_v52, %v889_v47  ;;  %v925_v35 = vor.u32 %v923_v27, %v921_v20  ;;  %v6933_v52 = vld [vmem:[%s7200_s9 + $0x70] sm:$0xff]  }
  0x50   : > { %v905_v0 = vrot.slane %v903_v54, 1  ;;  %v6936_v27 = vld [vmem:[%s7200_s9 + $0x30] sm:$0xff]  }
  0x51   : > { %v898_v5 = vsel %vm846_vm4, %v893_v60, %v897_v58  ;;  %v6929_v58 = vld [vmem:[%s7200_s9 + $0x10] sm:$0xfc]   ;;  %v6935_v60 = vld [vmem:[%s7200_s9 + $0x78] sm:$0xff]  }
  0x52   : > { %v906_v9 = vsel %vm846_vm4, %v901_v63, %v905_v0 }
  0x54   : > { %6213 = vmatmul.mubr.msk.bf16.gmra.mrb[28].mxu1 %vm370_vm1, %v6899_v59  ;;  %6379 = vmatmul.mubr.msk.bf16.gmra.mrb[4].mxu0 %vm370_vm1, %v3146_v2  ;;  %v6920_v59 = vld [vmem:[%s7200_s9 + $0x40] sm:$0xff]   ;;  %v3161_v2 = vrot.slane %v6915_v56, 2 }
  0x55   : > { %6216 = vmatprep.mubr.msk.bf16.mxu1 %vm370_vm1, %v6901_v40  ;;  %6382 = vmatprep.mubr.msk.bf16.mxu0 %vm370_vm1, %v3148_v8  ;;  %v3158_v40 = vsel %vm3137_vm3, %v3155_v32, %v3157_v48  ;;  %v911_v4 = vshll.u32 %v6920_v59, 16  ;;  %v907_v8 = vshrl.u32 %v6918_v44, 16  ;;  %v929_v32 = vrot.slane %v927_v23, 1  ;;  %v6927_v48 = vld [vmem:[%s7200_s9 + $0x98] ss:$0 sps:$4 sm:$0x33]  }
  0x56   : > { %v3164_v18 = vsel %vm3137_vm3, %v3161_v2, %v3163_v6  ;;  %v3173_v61 = vrot.slane %v6927_v48, 2  ;;  %v971_v23 = vshrl.u32 %v6935_v60, 16 }
  0x57   : > { %v913_v13 = vrot.slane %v911_v4, 1  ;;  %v909_v16 = vor.u32 %v907_v8, %v905_v0  ;;  %v933_v39 = vor.u32 %v931_v29, %v929_v32  ;;  %v930_v44 = vsel %vm846_vm4, %v925_v35, %v929_v32  ;;  %v6937_v8 = vld [vmem:[%s7200_s9 + $0x80] sm:$0xff]   ;;  %v6941_v29 = vld [vmem:[%s7200_s9 + $0x90] ss:$0 sps:$4 sm:$0x11]   ;;  %v6938_v32 = vld [vmem:[%s7200_s9 + $0x38] sm:$0xff]  }
  0x58   : > { %v3658_v41 = vrot.slane %v6938_v32, 2  ;;  %v6958_v32 = vld [vmem:[%s7200_s9 + $0x40] sm:$0xff]  }
  0x59   : > { %v914_v25 = vsel %vm846_vm4, %v909_v16, %v913_v13 }
  0x5c   : > { %6217 = vmatmul.mubr.msk.bf16.gmra.mrb[32].mxu1 %vm370_vm1, %v6903_v10  ;;  %6383 = vmatmul.mubr.msk.bf16.gmra.mrb[8].mxu0 %vm370_vm1, %v3150_v21  ;;  %v915_v10 = vshrl.u32 %v6920_v59, 16  ;;  %v6926_v21 = vld [vmem:[%s7200_s9 + $0x58] sm:$0xff]  }
  0x5d   : > { %6222 = vmatprep.mubr.msk.bf16.mxu1 %vm370_vm1, %v858_v15  ;;  %6386 = vmatprep.mubr.msk.bf16.mxu0 %vm370_vm1, %v3152_v24  ;;  %v3162_v15 = vsel %vm3137_vm3, %v3159_v49, %v3161_v2  ;;  %v3165_v24 = vrot.slane %v6919_v12, 2  ;;  %v935_v30 = vshll.u32 %v6926_v21, 16  ;;  %v939_v46 = vshrl.u32 %v6926_v21, 16 }
  0x5e   : > { %v917_v19 = vor.u32 %v915_v10, %v913_v13  ;;  %v947_v49 = vshrl.u32 %v6928_v33, 16  ;;  %v3649_v2 = vrot.slane %v6929_v58, 2  ;;  %v6934_v13 = vld [vmem:[%s7200_s9 + $0x28] sm:$0xff]   ;;  %v4386_v33 = vsel %vm425_vm0, %v7299_v57, 0 }
  0x5f   : > { %v3168_v38 = vsel %vm3137_vm3, %v3165_v24, %v3167_v26  ;;  %v937_v7 = vrot.slane %v935_v30, 1  ;;  %v3654_v21 = vrot.slane %v6934_v13, 2 }
  0x61   : > { %v938_v47 = vsel %vm846_vm4, %v933_v39, %v937_v7  ;;  %v941_v54 = vor.u32 %v939_v46, %v937_v7  ;;  %v991_v39 = vshll.u32 %v6941_v29, 16  ;;  %v3656_v7 = vrot.slane %v6936_v27, 2  ;;  %v6940_v46 = vld [vmem:[%s7200_s9 + $0x40] sm:$0xff]  }
  0x63   : > { %v3657_v48 = vsel %vm3137_vm3, %v3654_v21, %v3656_v7 }
  0x64   : > { %6223 = vmatmul.mubr.msk.bf16.vlgmr.msra.gmra.mrb[0].mxu1 %vm370_vm1, %v866_v31  ;;  %6387 = vmatmul.mubr.msk.bf16.gmra.mrb[12].mxu0 %vm370_vm1, %v3154_v42  ;;  %v6923_v31 = vld [vmem:[%s7200_s9 + $0x88] sm:$0xff]  }
  0x65   : > { %6226 = vmatprep.mubr.msk.bf16.mxu1 %vm370_vm1, %v874_v34  ;;  %6259 = vmatpush3.bf16.msra.mxu1 %v1562_v28  ;;  %v922_v28 = vsel %vm846_vm4, %v917_v19, %v921_v20  ;;  %v3166_v34 = vsel %vm3137_vm3, %v3163_v6, %v3165_v24  ;;  %v3169_v42 = vrot.slane %v6923_v31, 2  ;;  %v967_v6 = vshll.u32 %v6935_v60, 16  ;;  %v6945_v60 = vld [vmem:[%s7200_s9 + $0x50] sm:$0xff]  }
  0x66   : > { %6390 = vmatprep.mubr.msk.bf16.mxu0 %vm370_vm1, %v3156_v45  ;;  %6817 = vmatprep.subr.msk.bf16.mxu1 %vm425_vm0, %v7368_v22  ;;  %v3171_v45 = vrot.slane %v6925_v37, 2  ;;  %v3652_v19 = vrot.slane %v6932_v11, 2 }
  0x67   : > { %v3170_v53 = vsel %vm3137_vm3, %v3167_v26, %v3169_v42  ;;  %v969_v16 = vrot.slane %v967_v6, 1  ;;  %v983_v26 = vshll.u32 %v6939_v17, 16  ;;  %v6950_v6 = vld [vmem:[%s7200_s9 + $0x20] sm:$0xff]  }
  0x68   : > { %v3172_v56 = vsel %vm3137_vm3, %v3169_v42, %v3171_v45  ;;  %v3174_v10 = vsel %vm3137_vm3, %v3171_v45, %v3173_v61  ;;  %v987_v42 = vshrl.u32 %v6939_v17, 16  ;;  %v6943_v45 = vld [vmem:[%s7200_s9] sm:$0xfe]   ;;  %v1477_v13 = vrot.slane %v6950_v6, 1 }
  0x69   : > { %v973_v31 = vor.u32 %v971_v23, %v969_v16  ;;  %v985_v37 = vrot.slane %v983_v26, 1  ;;  %v6956_v23 = vld [vmem:[%s7200_s9 + $0x38] sm:$0xff]   ;;  %v6970_v6 = vld [vmem:[%s7200_s9 + $0x20] sm:$0xff]  }
  0x6a   : > { %v1483_v29 = vrot.slane %v6956_v23, 1 }
  0x6c   : > { %6227 = vmatmul.mubr.msk.bf16.gmra.mrb[4].mxu1 %vm370_vm1, %v882_v51  ;;  %6391 = vmatmul.mubr.msk.bf16.gmra.mrb[16].mxu0 %vm370_vm1, %v3158_v40  ;;  %v945_v51 = vrot.slane %v943_v43, 1  ;;  %v953_v40 = vrot.slane %v951_v50, 1  ;;  %v6944_v43 = vld [vmem:[%s7200_s9 + $0x8] sm:$0xff]   ;;  %v3659_v50 = vsel %vm3137_vm3, %v3656_v7, %v3658_v41  ;;  %v1485_v7 = vrot.slane %v6958_v32, 1 }
  0x6d   : > { %6230 = vmatprep.mubr.msk.bf16.mxu1 %vm370_vm1, %v890_v55  ;;  %6394 = vmatprep.mubr.msk.bf16.mxu0 %vm370_vm1, %v3160_v62  ;;  %v6930_v55 = vld [vmem:[%s7200_s9 + $0x18] sm:$0xff]   ;;  %v959_v62 = vshll.u32 %v6933_v52, 16 }
  0x6e   : > { %v949_v59 = vor.u32 %v947_v49, %v945_v51  ;;  %v946_v63 = vsel %vm846_vm4, %v941_v54, %v945_v51  ;;  %v3650_v0 = vrot.slane %v6930_v55, 2  ;;  %v957_v12 = vor.u32 %v955_v1, %v953_v40  ;;  %v6942_v51 = vld [vmem:[%s7200_s9 + $0x48] sm:$0xff]  }
  0x6f   : > { %v989_v49 = vor.u32 %v987_v42, %v985_v37  ;;  %v3660_v54 = vrot.slane %v6940_v46, 2  ;;  %v3662_v58 = vrot.slane %v6942_v51, 2 }
  0x70   : > { %v954_v4 = vsel %vm846_vm4, %v949_v59, %v953_v40  ;;  %v3651_v14 = vsel %vm3137_vm3, %v3649_v2, %v3650_v0  ;;  %v3653_v30 = vsel %vm3137_vm3, %v3650_v0, %v3652_v19  ;;  %v6948_v40 = vld [vmem:[%s7200_s9 + $0x18] sm:$0xff]   ;;  %v3664_v2 = vrot.slane %v6945_v60, 2 }
  0x71   : > { %v3661_v61 = vsel %vm3137_vm3, %v3658_v41, %v3660_v54  ;;  %v3663_v0 = vsel %vm3137_vm3, %v3660_v54, %v3662_v58  ;;  %v1475_v1 = vrot.slane %v6948_v40, 1  ;;  %v6959_v41 = vld [vmem:[%s7200_s9 + $0x88] sm:$0xff]   ;;  %v6963_v54 = vld [vmem:[%s7200_s9 + $0x98] sm:$0xff]  }
  0x72   : > { %v3665_v11 = vsel %vm3137_vm3, %v3662_v58, %v3664_v2  ;;  %v3678_v46 = vrot.slane %v6959_v41, 2  ;;  %v6966_v58 = vld [vmem:[%s7200_s9 + $0x60] sm:$0xff]   ;;  %v6969_v40 = vld [vmem:[%s7200_s9 + $0x68] sm:$0xff]  }
  0x74   : > { %6231 = vmatmul.mubr.msk.bf16.gmra.mrb[8].mxu1 %vm370_vm1, %v898_v5  ;;  %6395 = vmatmul.mubr.msk.bf16.gmra.mrb[20].mxu0 %vm370_vm1, %v3162_v15  ;;  %v963_v5 = vshrl.u32 %v6933_v52, 16  ;;  %v1470_v52 = vrot.slane %v6943_v45, 1  ;;  %v6962_v45 = vld [vmem:[%s7200_s9 + $0x50] sm:$0xff]  }
  0x75   : > { %6234 = vmatprep.mubr.msk.bf16.mxu1 %vm370_vm1, %v906_v9  ;;  %6398 = vmatprep.mubr.msk.bf16.mxu0 %vm370_vm1, %v3164_v18  ;;  %v961_v9 = vrot.slane %v959_v62, 1  ;;  %v975_v18 = vshll.u32 %v6937_v8, 16  ;;  %v1489_v51 = vrot.slane %v6962_v45, 1 }
  0x77   : > { %v965_v15 = vor.u32 %v963_v5, %v961_v9  ;;  %v962_v20 = vsel %vm846_vm4, %v957_v12, %v961_v9  ;;  %v6952_v9 = vld [vmem:[%s7200_s9 + $0x28] sm:$0xff]   ;;  %v6949_v12 = vld [vmem:[%s7200_s9 + $0x60] sm:$0xff]  }
  0x78   : > { %v3668_v17 = vrot.slane %v6949_v12, 2  ;;  %v6972_v12 = vld [vmem:[%s7200_s9 + $0x28] sm:$0xff]  }
  0x79   : > { %v970_v24 = vsel %vm846_vm4, %v965_v15, %v969_v16  ;;  %v6951_v15 = vld [vmem:[%s7200_s9 + $0x68] sm:$0xff]   ;;  %v1479_v16 = vrot.slane %v6952_v9, 1 }
  0x7c   : > { %6235 = vmatmul.mubr.msk.bf16.gmra.mrb[12].mxu1 %vm370_vm1, %v914_v25  ;;  %6399 = vmatmul.mubr.msk.bf16.gmra.mrb[24].mxu0 %vm370_vm1, %v3166_v34  ;;  %v979_v25 = vshrl.u32 %v6937_v8, 16  ;;  %v3655_v34 = vsel %vm3137_vm3, %v3652_v19, %v3654_v21  ;;  %v6954_v19 = vld [vmem:[%s7200_s9 + $0x30] sm:$0xff]   ;;  %v1480_v21 = vsel %vm1469_vm5, %v1477_v13, %v1479_v16 }
  0x7d   : > { %6238 = vmatprep.mubr.msk.bf16.mxu1 %vm370_vm1, %v922_v28  ;;  %6402 = vmatprep.mubr.msk.bf16.mxu0 %vm370_vm1, %v3168_v38  ;;  %v977_v28 = vrot.slane %v975_v18, 1  ;;  %v7425_v38 = vld [vmem:[%s7875_s1 + $0x10] sm:$0x3]  ;;  %v1478_v18 = vsel %vm1469_vm5, %v1475_v1, %v1477_v13  ;;  %v1481_v26 = vrot.slane %v6954_v19, 1  ;;  %v4182_v19 = vshll.u32 %v6970_v6, 16 }
  0x7f   : > { %v981_v35 = vor.u32 %v979_v25, %v977_v28  ;;  %v978_v57 = vsel %vm846_vm4, %v973_v31, %v977_v28  ;;  %v6953_v25 = vld [vmem:[%s7200_s9 + $0x70] sm:$0xff]   ;;  %v6955_v28 = vld [vmem:[%s7200_s9 + $0x78] sm:$0xff]   ;;  %v1482_v31 = vsel %vm1469_vm5, %v1479_v16, %v1481_v26 }
  0x84   : > { %6239 = vmatmul.mubr.msk.bf16.gmra.mrb[16].mxu1 %vm370_vm1, %v930_v44  ;;  %6403 = vmatmul.mubr.msk.bf16.gmra.mrb[28].mxu0 %vm370_vm1, %v3170_v53  ;;  %v986_v44 = vsel %vm846_vm4, %v981_v35, %v985_v37  ;;  %v1471_v53 = vrot.slane %v6944_v43, 1  ;;  %v6960_v35 = vld [vmem:[%s7200_s9 + $0x48] sm:$0xff]  }
  0x85   : > { %6242 = vmatprep.mubr.msk.bf16.mxu1 %vm370_vm1, %v938_v47  ;;  %6406 = vmatprep.mubr.msk.bf16.mxu0 %vm370_vm1, %v3172_v56  ;;  %v993_v47 = vrot.slane %v991_v39, 1  ;;  %v6946_v56 = vld [vmem:[%s7200_s9 + $0x10] sm:$0xff]   ;;  %v6957_v39 = vld [vmem:[%s7200_s9 + $0x80] sm:$0xff]   ;;  %v1487_v42 = vrot.slane %v6960_v35, 1 }
  0x86   : > { %v1472_v59 = vsel %vm1469_vm5, %v1470_v52, %v1471_v53  ;;  %v1473_v62 = vrot.slane %v6946_v56, 1  ;;  %v3676_v43 = vrot.slane %v6957_v39, 2  ;;  %v6968_v52 = vld [vmem:[%s7200_s9 + $0x18] sm:$0xff]   ;;  %v6967_v56 = vld [vmem:[%s7200_s9 + $0x10] sm:$0xfc]   ;;  %v6975_v39 = vld [vmem:[%s7200_s9 + $0x80] sm:$0xff]  }
  0x87   : > { %v994_v55 = vsel %vm846_vm4, %v989_v49, %v993_v47  ;;  %v1488_v47 = vsel %vm1469_vm5, %v1485_v7, %v1487_v42  ;;  %v6961_v49 = vld [vmem:[%s7200_s9 + $0x90] sm:$0xff]   ;;  %v1490_v60 = vsel %vm1469_vm5, %v1487_v42, %v1489_v51 }
  0x88   : > { %v1476_v8 = vsel %vm1469_vm5, %v1473_v62, %v1475_v1 }
  0x8c   : > { %6243 = vmatmul.mubr.msk.bf16.gmra.mrb[20].mxu1 %vm370_vm1, %v946_v63  ;;  %6407 = vmatmul.mubr.msk.bf16.gmra.mrb[32].mxu0 %vm370_vm1, %v3174_v10  ;;  %v6947_v63 = vld [vmem:[%s7200_s9 + $0x58] sm:$0xff]   ;;  %v2073_v10 = vsel %vm425_vm0, %v7368_v22, 0  ;;  %v7038_v22 = vld [vmem:[%s7875_s1 + $0x8] sm:$0x3] }
  0x8d   : > { %6246 = vmatprep.mubr.msk.bf16.mxu1 %vm370_vm1, %v954_v4  ;;  %6412 = vmatprep.mubr.msk.bf16.mxu0 %vm370_vm1, %v3651_v14  ;;  %v1474_v4 = vsel %vm1469_vm5, %v1471_v53, %v1473_v62  ;;  %v3666_v5 = vrot.slane %v6947_v63, 2  ;;  %v3679_v53 = vsel %vm3137_vm3, %v3676_v43, %v3678_v46  ;;  %v4170_v62 = vshrl.u32 %v6968_v52, 16 }
  0x8e   : > { %v4173_v63 = vshll.u32 %v6968_v52, 16 }
  0x8f   : > { %v3667_v14 = vsel %vm3137_vm3, %v3664_v2, %v3666_v5  ;;  %v4162_v2 = vshrl.u32 %v6967_v56, 16  ;;  %v4172_v9 = vrot.slane %v4170_v62, 2 }
  0x94   : > { %6247 = vmatmul.mubr.msk.bf16.gmra.mrb[24].mxu1 %vm370_vm1, %v962_v20  ;;  %6413 = vmatmul.mubr.msk.bf16.vlgmr.msra.gmra.mrb[0].mxu0 %vm370_vm1, %v3653_v30  ;;  %v3670_v20 = vrot.slane %v6951_v15, 2  ;;  %v3672_v30 = vrot.slane %v6953_v25, 2  ;;  %v4191_v25 = vshll.u32 %v6972_v12, 16 }
  0x95   : > { %6250 = vmatprep.mubr.msk.bf16.mxu1 %vm370_vm1, %v970_v24  ;;  %6449 = vmatpush3.bf16.msra.mxu0 %v4386_v33  ;;  %v3669_v24 = vsel %vm3137_vm3, %v3666_v5, %v3668_v17  ;;  %v3674_v33 = vrot.slane %v6955_v28, 2  ;;  %v1493_v5 = vrot.slane %v6966_v58, 1  ;;  %v6974_v28 = vld [vmem:[%s7200_s9 + $0x30] sm:$0xff]  }
  0x96   : > { %6416 = vmatprep.mubr.msk.bf16.mxu0 %vm370_vm1, %v3655_v34  ;;  %6823 = vmatprep.subr.msk.bf16.mxu0 %vm425_vm0, %v7425_v38  ;;  %v3671_v27 = vsel %vm3137_vm3, %v3668_v17, %v3670_v20  ;;  %v1484_v34 = vsel %vm1469_vm5, %v1481_v26, %v1483_v29  ;;  %v3673_v37 = vsel %vm3137_vm3, %v3670_v20, %v3672_v30  ;;  %v6971_v17 = vld [vmem:[%s7200_s9 + $0x70] sm:$0xff]   ;;  %v4188_v20 = vshrl.u32 %v6972_v12, 16  ;;  %v6973_v26 = vld [vmem:[%s7200_s9 + $0x78] sm:$0xff]  }
  0x97   : > { %v4193_v35 = vrot.slane %v4191_v25, 3  ;;  %v6983_v12 = vld [vmem:[%s7200_s9 + $0x50] sm:$0xff]  }
  0x98   : > { %v4190_v32 = vrot.slane %v4188_v20, 2  ;;  %v4236_v20 = vshll.u32 %v6983_v12, 16 }
  0x9a   : > { %v4194_v45 = vor.u32 %v4193_v35, %v4190_v32  ;;  %v6987_v32 = vld [vmem:[%s7200_s9 + $0x60] sm:$0xff]  }
  0x9c   : > { %6251 = vmatmul.mubr.msk.bf16.gmra.mrb[28].mxu1 %vm370_vm1, %v978_v57  ;;  %6417 = vmatmul.mubr.msk.bf16.gmra.mrb[4].mxu0 %vm370_vm1, %v3657_v48  ;;  %v3675_v57 = vsel %vm3137_vm3, %v3672_v30, %v3674_v33  ;;  %v6964_v48 = vld [vmem:[%s7200_s9 + $0x58] sm:$0xff]  }
  0x9d   : > { %6254 = vmatprep.mubr.msk.bf16.mxu1 %vm370_vm1, %v986_v44  ;;  %6420 = vmatprep.mubr.msk.bf16.mxu0 %vm370_vm1, %v3659_v50  ;;  %v1486_v44 = vsel %vm1469_vm5, %v1483_v29, %v1485_v7  ;;  %v3677_v50 = vsel %vm3137_vm3, %v3674_v33, %v3676_v43  ;;  %v6976_v33 = vld [vmem:[%s7200_s9 + $0x38] sm:$0xff]   ;;  %v4197_v7 = vshrl.u32 %v6974_v28, 16 }
  0x9e   : > { %v4206_v43 = vshrl.u32 %v6976_v33, 16 }
  0xa4   : > { %6255 = vmatmul.mubr.msk.bf16.gmra.mrb[32].mxu1 %vm370_vm1, %v994_v55  ;;  %6421 = vmatmul.mubr.msk.bf16.gmra.mrb[8].mxu0 %vm370_vm1, %v3661_v61  ;;  %v1491_v55 = vrot.slane %v6964_v48, 1  ;;  %v6965_v61 = vld [vmem:[%s7200_s9 + $0xa0] ss:$0 sps:$4 sm:$0x33]   ;;  %v4199_v48 = vrot.slane %v4197_v7, 2 }
  0xa5   : > { %6260 = vmatprep.mubr.msk.bf16.mxu1 %vm370_vm1, %v1472_v59  ;;  %6424 = vmatprep.mubr.msk.bf16.mxu0 %vm370_vm1, %v3663_v0  ;;  %v3680_v59 = vrot.slane %v6961_v49, 2  ;;  %v3682_v0 = vrot.slane %v6963_v54, 2  ;;  %v3684_v16 = vrot.slane %v6965_v61, 2 }
  0xa6   : > { %v1492_v1 = vsel %vm1469_vm5, %v1489_v51, %v1491_v55  ;;  %v6978_v51 = vld [vmem:[%s7200_s9 + $0x40] sm:$0xff]  }
  0xa7   : > { %v3683_v13 = vsel %vm3137_vm3, %v3680_v59, %v3682_v0  ;;  %v3685_v29 = vsel %vm3137_vm3, %v3682_v0, %v3684_v16  ;;  %v4215_v62 = vshrl.u32 %v6978_v51, 16  ;;  %v6979_v0 = vld [vmem:[%s7200_s9 + $0x90] ss:$0 sps:$4 sm:$0x11]  }
  0xac   : > { %6261 = vmatmul.mubr.msk.bf16.vlgmr.msra.gmra.mrb[0].mxu1 %vm370_vm1, %v1474_v4  ;;  %6425 = vmatmul.mubr.msk.bf16.gmra.mrb[12].mxu0 %vm370_vm1, %v3665_v11  ;;  %v4165_v4 = vshll.u32 %v6967_v56, 16  ;;  %v1495_v11 = vrot.slane %v6969_v40, 1 }
  0xad   : > { %6264 = vmatprep.mubr.msk.bf16.mxu1 %vm370_vm1, %v1476_v8  ;;  %6297 = vmatpush3.bf16.msra.mxu1 %v2073_v10  ;;  %v3681_v8 = vsel %vm3137_vm3, %v3678_v46, %v3680_v59  ;;  %v4175_v10 = vrot.slane %v4173_v63, 3  ;;  %v6980_v59 = vld [vmem:[%s7200_s9 + $0x48] sm:$0xff]   ;;  %v4218_v63 = vshll.u32 %v6978_v51, 16 }
  0xae   : > { %6819 = vmatprep.subr.msk.bf16.mxu1 %vm425_vm0, %v7038_v22  ;;  %6428 = vmatprep.mubr.msk.bf16.mxu0 %vm370_vm1, %v3667_v14  ;;  %v4164_v14 = vrot.slane %v4162_v2, 2  ;;  %v4167_v15 = vrot.slane %v4165_v4, 3  ;;  %v4179_v22 = vshrl.u32 %v6970_v6, 16  ;;  %v4227_v2 = vshll.u32 %v6980_v59, 16  ;;  %v6981_v4 = vld [vmem:[%s7200_s9 + $0x8] sm:$0xfe]  }
  0xaf   : > { %v4176_v23 = vor.u32 %v4175_v10, %v4172_v9  ;;  %v4217_v9 = vrot.slane %v4215_v62, 2  ;;  %v4220_v10 = vrot.slane %v4218_v63, 3  ;;  %v6992_v63 = vld [vmem:[%s7200_s9 + $0x38] sm:$0xff]  }
  0xb0   : > { %v4181_v30 = vrot.slane %v4179_v22, 2  ;;  %v6985_v22 = vld [vmem:[%s7200_s9 + $0x58] sm:$0xff]  }
  0xb1   : > { %v4242_v25 = vshrl.u32 %v6985_v22, 16 }
  0xb4   : > { %6265 = vmatmul.mubr.msk.bf16.gmra.mrb[4].mxu1 %vm370_vm1, %v1478_v18  ;;  %6429 = vmatmul.mubr.msk.bf16.gmra.mrb[16].mxu0 %vm370_vm1, %v3669_v24  ;;  %v1494_v18 = vsel %vm1469_vm5, %v1491_v55, %v1493_v5  ;;  %v1496_v24 = vsel %vm1469_vm5, %v1493_v5, %v1495_v11  ;;  %v4898_v55 = vsel %vm425_vm0, %v7425_v38, 0  ;;  %v6982_v5 = vld [vmem:[%s7200_s9 + $0x10] sm:$0xff]  }
  0xb5   : > { %6268 = vmatprep.mubr.msk.bf16.mxu1 %vm370_vm1, %v1480_v21  ;;  %6432 = vmatprep.mubr.msk.bf16.mxu0 %vm370_vm1, %v3671_v27  ;;  %v4168_v21 = vor.u32 %v4167_v15, %v4164_v14  ;;  %v1497_v27 = vrot.slane %v6971_v17, 1  ;;  %v4229_v14 = vrot.slane %v4227_v2, 3  ;;  %v1981_v15 = vrot.slane %v6981_v4, 1  ;;  %v6994_v2 = vld [vmem:[%s7200_s9 + $0x40] sm:$0xff]  }
  0xb6   : > { %v1982_v16 = vrot.slane %v6982_v5, 1  ;;  %v4221_v17 = vor.u32 %v4220_v10, %v4217_v9  ;;  %v6995_v9 = vld [vmem:[%s7200_s9 + $0x80] sm:$0xff]  }
  0xb7   : > { %v1498_v42 = vsel %vm1469_vm5, %v1495_v11, %v1497_v27  ;;  %v1505_v11 = vrot.slane %v6979_v0, 1 }
  0xbc   : > { %6269 = vmatmul.mubr.msk.bf16.gmra.mrb[8].mxu1 %vm370_vm1, %v1482_v31  ;;  %6433 = vmatmul.mubr.msk.bf16.gmra.mrb[20].mxu0 %vm370_vm1, %v3673_v37  ;;  %v4184_v31 = vrot.slane %v4182_v19, 3  ;;  %v1499_v37 = vrot.slane %v6973_v26, 1  ;;  %v4233_v19 = vshrl.u32 %v6983_v12, 16  ;;  %v4245_v26 = vshll.u32 %v6985_v22, 16 }
  0xbd   : > { %6272 = vmatprep.mubr.msk.bf16.mxu1 %vm370_vm1, %v1484_v34  ;;  %6436 = vmatprep.mubr.msk.bf16.mxu0 %vm370_vm1, %v3675_v57  ;;  %v4177_v34 = vsel %vm4160_vm6, %v4168_v21, %v4176_v23  ;;  %v4200_v57 = vshll.u32 %v6974_v28, 16  ;;  %v6984_v21 = vld [vmem:[%s7200_s9 + $0x18] sm:$0xff]   ;;  %v4287_v22 = vshrl.u32 %v6995_v9, 16 }
  0xbe   : > { %v4185_v41 = vor.u32 %v4184_v31, %v4181_v30  ;;  %v1500_v46 = vsel %vm1469_vm5, %v1497_v27, %v1499_v37  ;;  %v6986_v27 = vld [vmem:[%s7200_s9 + $0x20] sm:$0xff]   ;;  %v4238_v30 = vrot.slane %v4236_v20, 3  ;;  %v1984_v31 = vrot.slane %v6984_v21, 1 }
  0xbf   : > { %v4202_v49 = vrot.slane %v4200_v57, 3  ;;  %v4247_v35 = vrot.slane %v4245_v26, 3  ;;  %v4289_v26 = vrot.slane %v4287_v22, 2 }
  0xc0   : > { %v4186_v52 = vsel %vm4160_vm6, %v4176_v23, %v4185_v41  ;;  %v4195_v56 = vsel %vm4160_vm6, %v4185_v41, %v4194_v45  ;;  %v1985_v57 = vsel %vm1469_vm5, %v1982_v16, %v1984_v31  ;;  %v4251_v41 = vshrl.u32 %v6987_v32, 16 }
  0xc1   : > { %v4203_v40 = vor.u32 %v4202_v49, %v4199_v48  ;;  %v6990_v48 = vld [vmem:[%s7200_s9 + $0x30] sm:$0xff]  }
  0xc3   : > { %v4204_v6 = vsel %vm4160_vm6, %v4194_v45, %v4203_v40 }
  0xc4   : > { %6273 = vmatmul.mubr.msk.bf16.gmra.mrb[12].mxu1 %vm370_vm1, %v1486_v44  ;;  %6437 = vmatmul.mubr.msk.bf16.gmra.mrb[24].mxu0 %vm370_vm1, %v3677_v50  ;;  %v4209_v44 = vshll.u32 %v6976_v33, 16  ;;  %v1501_v50 = vrot.slane %v6975_v39, 1  ;;  %v6989_v39 = vld [vmem:[%s7200_s9 + $0x68] sm:$0xff]  }
  0xc5   : > { %6276 = vmatprep.mubr.msk.bf16.mxu1 %vm370_vm1, %v1488_v47  ;;  %6440 = vmatprep.mubr.msk.bf16.mxu0 %vm370_vm1, %v3679_v53  ;;  %v6977_v47 = vld [vmem:[%s7200_s9 + $0x88] sm:$0xff]   ;;  %v4208_v53 = vrot.slane %v4206_v43, 2 }
  0xc6   : > { %v4211_v54 = vrot.slane %v4209_v44, 3  ;;  %v1503_v58 = vrot.slane %v6977_v47, 1  ;;  %v6988_v43 = vld [vmem:[%s7200_s9 + $0x28] sm:$0xff]   ;;  %v4263_v47 = vshll.u32 %v6989_v39, 16 }
  0xc8   : > { %v4212_v61 = vor.u32 %v4211_v54, %v4208_v53  ;;  %v1504_v38 = vsel %vm1469_vm5, %v1501_v50, %v1503_v58  ;;  %v6991_v53 = vld [vmem:[%s7200_s9 + $0x70] sm:$0xff]  }
  0xc9   : > { %v4272_v62 = vshll.u32 %v6991_v53, 16 }
  0xca   : > { %v4222_v28 = vsel %vm4160_vm6, %v4212_v61, %v4221_v17 }
  0xcc   : > { %6277 = vmatmul.mubr.msk.bf16.gmra.mrb[16].mxu1 %vm370_vm1, %v1490_v60  ;;  %6441 = vmatmul.mubr.msk.bf16.gmra.mrb[28].mxu0 %vm370_vm1, %v3681_v8  ;;  %v1502_v60 = vsel %vm1469_vm5, %v1499_v37, %v1501_v50  ;;  %v4213_v8 = vsel %vm4160_vm6, %v4203_v40, %v4212_v61  ;;  %v1986_v37 = vrot.slane %v6986_v27, 1  ;;  %v4253_v50 = vrot.slane %v4251_v41, 2 }
  0xcd   : > { %6280 = vmatprep.mubr.msk.bf16.mxu1 %vm370_vm1, %v1492_v1  ;;  %6444 = vmatprep.mubr.msk.bf16.mxu0 %vm370_vm1, %v3683_v13  ;;  %v4224_v1 = vshrl.u32 %v6980_v59, 16  ;;  %v6993_v59 = vld [vmem:[%s7200_s9 + $0x78] sm:$0xff]   ;;  %v4269_v61 = vshrl.u32 %v6991_v53, 16 }
  0xce   : > { %v1987_v45 = vsel %vm1469_vm5, %v1984_v31, %v1986_v37 }
  0xcf   : > { %v4226_v13 = vrot.slane %v4224_v1, 2  ;;  %v4281_v1 = vshll.u32 %v6993_v59, 16  ;;  %v4271_v5 = vrot.slane %v4269_v61, 2 }
  0xd1   : > { %v4230_v23 = vor.u32 %v4229_v14, %v4226_v13  ;;  %v4283_v12 = vrot.slane %v4281_v1, 3  ;;  %v1994_v13 = vrot.slane %v6994_v2, 1  ;;  %v6997_v14 = vld [vmem:[%s7200_s9 + $0x88] sm:$0xff]   ;;  %v7005_v2 = vld [vmem:[%s7200_s9 + $0x10] sm:$0xf8]  }
  0xd2   : > { %v4296_v21 = vshrl.u32 %v6997_v14, 16 }
  0xd3   : > { %v4231_v33 = vsel %vm4160_vm6, %v4221_v17, %v4230_v23  ;;  %v4290_v17 = vshll.u32 %v6995_v9, 16  ;;  %v7009_v9 = vld [vmem:[%s7200_s9 + $0x78] sm:$0xff]  }
  0xd4   : > { %6281 = vmatmul.mubr.msk.bf16.gmra.mrb[20].mxu1 %vm370_vm1, %v1494_v18  ;;  %6445 = vmatmul.mubr.msk.bf16.gmra.mrb[32].mxu0 %vm370_vm1, %v3685_v29  ;;  %v1506_v18 = vsel %vm1469_vm5, %v1503_v58, %v1505_v11  ;;  %v4235_v29 = vrot.slane %v4233_v19, 2  ;;  %v1990_v58 = vrot.slane %v6990_v48, 1  ;;  %v4298_v31 = vrot.slane %v4296_v21, 2  ;;  %v7013_v21 = vld [vmem:[%s7200_s9 + $0x88] sm:$0xff]  }
  0xd5   : > { %6284 = vmatprep.mubr.msk.bf16.mxu1 %vm370_vm1, %v1496_v24  ;;  %6450 = vmatprep.mubr.msk.bf16.mxu0 %vm370_vm1, %v4177_v34  ;;  %v1983_v24 = vsel %vm1469_vm5, %v1981_v15, %v1982_v16  ;;  %v4244_v34 = vrot.slane %v4242_v25, 2  ;;  %v4292_v27 = vrot.slane %v4290_v17, 3  ;;  %v7010_v17 = vld [vmem:[%s7200_s9 + $0x28] sm:$0xff]  }
  0xd6   : > { %v4239_v7 = vor.u32 %v4238_v30, %v4235_v29  ;;  %v6999_v29 = vld [vmem:[%s7200_s9 + $0x90] sm:$0xff]  }
  0xd7   : > { %v4248_v44 = vor.u32 %v4247_v35, %v4244_v34  ;;  %v7001_v34 = vld [vmem:[%s7200_s9 + $0x98] sm:$0xff]   ;;  %v4293_v35 = vor.u32 %v4292_v27, %v4289_v26  ;;  %v7019_v26 = vld [vmem:[%s7200_s9 + $0x60] sm:$0xff]  }
  0xd8   : > { %v4240_v49 = vsel %vm4160_vm6, %v4230_v23, %v4239_v7  ;;  %v4299_v23 = vshll.u32 %v6997_v14, 16 }
  0xd9   : > { %v4249_v54 = vsel %vm4160_vm6, %v4239_v7, %v4248_v44  ;;  %v4308_v7 = vshll.u32 %v6999_v29, 16 }
  0xdb   : > { %v4310_v48 = vrot.slane %v4308_v7, 3  ;;  %v7021_v7 = vld [vmem:[%s7200_s9 + $0x68] sm:$0xff]  }
  0xdc   : > { %6285 = vmatmul.mubr.msk.bf16.gmra.mrb[24].mxu1 %vm370_vm1, %v1498_v42  ;;  %6451 = vmatmul.mubr.msk.bf16.vlgmr.msra.gmra.mrb[0].mxu0 %vm370_vm1, %v4186_v52  ;;  %v4254_v42 = vshll.u32 %v6987_v32, 16  ;;  %v1988_v52 = vrot.slane %v6988_v43, 1  ;;  %v4301_v32 = vrot.slane %v4299_v23, 3  ;;  %v4314_v43 = vshrl.u32 %v7001_v34, 16 }
  0xdd   : > { %6288 = vmatprep.mubr.msk.bf16.mxu1 %vm370_vm1, %v1500_v46  ;;  %6487 = vmatpush3.bf16.msra.mxu0 %v4898_v55  ;;  %v4260_v46 = vshrl.u32 %v6989_v39, 16  ;;  %v4305_v39 = vshrl.u32 %v6999_v29, 16  ;;  %v4811_v23 = vrot.slane %v7010_v17, 3  ;;  %v2012_v29 = vrot.slane %v7013_v21, 1 }
  0xde   : > { %6454 = vmatprep.mubr.msk.bf16.mxu0 %vm370_vm1, %v4195_v56  ;;  %v4256_v51 = vrot.slane %v4254_v42, 3  ;;  %v4265_v56 = vrot.slane %v4263_v47, 3  ;;  %v1991_v0 = vsel %vm1469_vm5, %v1988_v52, %v1990_v58  ;;  %v4302_v41 = vor.u32 %v4301_v32, %v4298_v31  ;;  %v7014_v31 = vld [vmem:[%s7200_s9 + $0x38] sm:$0xff]  }
  0xdf   : > { %v4262_v55 = vrot.slane %v4260_v46, 2  ;;  %v4307_v47 = vrot.slane %v4305_v39, 2  ;;  %v7017_v39 = vld [vmem:[%s7200_s9 + $0x98] ss:$0 sps:$4 sm:$0x11]  }
  0xe0   : > { %v4257_v40 = vor.u32 %v4256_v51, %v4253_v50  ;;  %v7003_v50 = vld [vmem:[%s7200_s9 + $0xa0] ss:$0 sps:$4 sm:$0x77]   ;;  %v4303_v51 = vsel %vm4160_vm6, %v4293_v35, %v4302_v41 }
  0xe2   : > { %v4258_v4 = vsel %vm4160_vm6, %v4248_v44, %v4257_v40  ;;  %v4317_v44 = vshll.u32 %v7001_v34, 16  ;;  %v2595_v34 = vshll.u32 %v7019_v26, 16 }
  0xe4   : > { %6289 = vmatmul.mubr.msk.bf16.gmra.mrb[28].mxu1 %vm370_vm1, %v1502_v60  ;;  %6455 = vmatmul.mubr.msk.bf16.gmra.mrb[4].mxu0 %vm370_vm1, %v4204_v6  ;;  %v1989_v60 = vsel %vm1469_vm5, %v1986_v37, %v1988_v52  ;;  %v4274_v6 = vrot.slane %v4272_v62, 3  ;;  %v4316_v52 = vrot.slane %v4314_v43, 2  ;;  %v4319_v53 = vrot.slane %v4317_v44, 3  ;;  %v7007_v62 = vld [vmem:[%s7200_s9 + $0x70] sm:$0xff]  }
  0xe5   : > { %6292 = vmatprep.mubr.msk.bf16.mxu1 %vm370_vm1, %v1504_v38  ;;  %6458 = vmatprep.mubr.msk.bf16.mxu0 %vm370_vm1, %v4213_v8  ;;  %v4278_v38 = vshrl.u32 %v6993_v59, 16  ;;  %v1992_v8 = vrot.slane %v6992_v63, 1  ;;  %v4326_v59 = vshll.u32 %v7003_v50, 16  ;;  %v2597_v43 = vrot.slane %v2595_v34, 2  ;;  %v7023_v44 = vld [vmem:[%s7200_s9 + $0x70] sm:$0xff]  }
  0xe6   : > { %v4275_v15 = vor.u32 %v4274_v6, %v4271_v5  ;;  %v2006_v5 = vrot.slane %v7007_v62, 1  ;;  %v7033_v34 = vld [vmem:[%s7200_s9 + $0x98] ss:$0 sps:$4 sm:$0x33]  }
  0xe7   : > { %v4280_v11 = vrot.slane %v4278_v38, 2  ;;  %v1993_v16 = vsel %vm1469_vm5, %v1990_v58, %v1992_v8  ;;  %v1995_v20 = vsel %vm1469_vm5, %v1992_v8, %v1994_v13  ;;  %v4323_v58 = vshrl.u32 %v7003_v50, 16 }
  0xe9   : > { %v4284_v19 = vor.u32 %v4283_v12, %v4280_v11 }
  0xeb   : > { %v4285_v30 = vsel %vm4160_vm6, %v4275_v15, %v4284_v19  ;;  %v4294_v46 = vsel %vm4160_vm6, %v4284_v19, %v4293_v35 }
  0xec   : > { %6293 = vmatmul.mubr.msk.bf16.gmra.mrb[32].mxu1 %vm370_vm1, %v1506_v18  ;;  %6459 = vmatmul.mubr.msk.bf16.gmra.mrb[8].mxu0 %vm370_vm1, %v4222_v28  ;;  %v6996_v18 = vld [vmem:[%s7200_s9 + $0x48] sm:$0xff]  }
  0xed   : > { %6298 = vmatprep.mubr.msk.bf16.mxu1 %vm370_vm1, %v1983_v24  ;;  %6462 = vmatprep.mubr.msk.bf16.mxu0 %vm370_vm1, %v4231_v33  ;;  %v6998_v24 = vld [vmem:[%s7200_s9 + $0x50] sm:$0xff]   ;;  %v1996_v28 = vrot.slane %v6996_v18, 1 }
  0xee   : > { %v1998_v33 = vrot.slane %v6998_v24, 1 }
  0xef   : > { %v1997_v37 = vsel %vm1469_vm5, %v1994_v13, %v1996_v28  ;;  %v7011_v13 = vld [vmem:[%s7200_s9 + $0x80] sm:$0xff]  }
  0xf0   : > { %v1999_v42 = vsel %vm1469_vm5, %v1996_v28, %v1998_v33  ;;  %v2010_v18 = vrot.slane %v7011_v13, 1  ;;  %v7012_v28 = vld [vmem:[%s7200_s9 + $0x30] sm:$0xff]  }
  0xf1   : > { %v4813_v35 = vrot.slane %v7012_v28, 3 }
  0xf4   : > { %6299 = vmatmul.mubr.msk.bf16.vlgmr.msra.gmra.mrb[0].mxu1 %vm370_vm1, %v1985_v57  ;;  %6463 = vmatmul.mubr.msk.bf16.gmra.mrb[12].mxu0 %vm370_vm1, %v4240_v49  ;;  %v7000_v57 = vld [vmem:[%s7200_s9 + $0x58] sm:$0xff]  }
  0xf5   : > { %6302 = vmatprep.mubr.msk.bf16.mxu1 %vm370_vm1, %v1987_v45  ;;  %6525 = vmatpush3.bf16.msra.mxu1 %v7186_v3  ;;  %v4266_v3 = vor.u32 %v4265_v56, %v4262_v55  ;;  %v7002_v45 = vld [vmem:[%s7200_s9 + $0x60] sm:$0xff]   ;;  %v2000_v49 = vrot.slane %v7000_v57, 1  ;;  %v4311_v55 = vor.u32 %v4310_v48, %v4307_v47  ;;  %v4815_v57 = vrot.slane %v7014_v31, 3 }
  0xf6   : > { %6466 = vmatprep.mubr.msk.bf16.mxu0 %vm370_vm1, %v4249_v54  ;;  %v2002_v54 = vrot.slane %v7002_v45, 1  ;;  %v4814_v45 = vsel %vm4805_vm7, %v4811_v23, %v4813_v35  ;;  %v2016_v47 = vrot.slane %v7017_v39, 1  ;;  %v2601_v48 = vshrl.u32 %v7021_v7, 16 }
  0xf7   : > { %v4267_v10 = vsel %vm4160_vm6, %v4257_v40, %v4266_v3  ;;  %v4276_v25 = vsel %vm4160_vm6, %v4266_v3, %v4275_v15  ;;  %v2001_v56 = vsel %vm1469_vm5, %v1998_v33, %v2000_v49  ;;  %v7004_v40 = vld [vmem:[%s7200_s9 + $0x68] sm:$0xff]   ;;  %v4312_v63 = vsel %vm4160_vm6, %v4302_v41, %v4311_v55  ;;  %v7008_v15 = vld [vmem:[%s7200_s9 + $0x20] sm:$0xff]  }
  0xf8   : > { %v2003_v61 = vsel %vm1469_vm5, %v2000_v49, %v2002_v54  ;;  %v4325_v3 = vrot.slane %v4323_v58, 2  ;;  %v2004_v38 = vrot.slane %v7004_v40, 1  ;;  %v4809_v19 = vrot.slane %v7008_v15, 3  ;;  %v7025_v40 = vld [vmem:[%s7200_s9 + $0x78] sm:$0xff]  }
  0xf9   : > { %v2592_v33 = vshrl.u32 %v7019_v26, 16  ;;  %v2604_v49 = vshll.u32 %v7021_v7, 16  ;;  %v4816_v50 = vsel %vm4805_vm7, %v4813_v35, %v4815_v57  ;;  %v2603_v58 = vrot.slane %v2601_v48, 1  ;;  %v7026_v26 = vld [vmem:[%s7200_s9 + $0x68] sm:$0xff]  }
  0xfa   : > { %v2005_v8 = vsel %vm1469_vm5, %v2002_v54, %v2004_v38  ;;  %v2007_v12 = vsel %vm1469_vm5, %v2004_v38, %v2006_v5  ;;  %v2613_v54 = vshll.u32 %v7023_v44, 16  ;;  %v7020_v38 = vld [vmem:[%s7200_s9 + $0x50] sm:$0xff]   ;;  %v4827_v35 = vrot.slane %v7026_v26, 3 }
  0xfc   : > { %6303 = vmatmul.mubr.msk.bf16.gmra.mrb[4].mxu1 %vm370_vm1, %v1989_v60  ;;  %6467 = vmatmul.mubr.msk.bf16.gmra.mrb[16].mxu0 %vm370_vm1, %v4258_v4  ;;  %v4320_v60 = vor.u32 %v4319_v53, %v4316_v52  ;;  %v7006_v4 = vld [vmem:[%s7200_s9 + $0x18] sm:$0xff]   ;;  %v2610_v53 = vshrl.u32 %v7023_v44, 16  ;;  %v2658_v44 = vshll.u32 %v7033_v34, 16 }
  0xfd   : > { %6306 = vmatprep.mubr.msk.bf16.mxu1 %vm370_vm1, %v1991_v0  ;;  %6470 = vmatprep.mubr.msk.bf16.mxu0 %vm370_vm1, %v4267_v10  ;;  %v4328_v0 = vrot.slane %v4326_v59, 3  ;;  %v4806_v10 = vrot.slane %v7005_v2, 3  ;;  %v4807_v11 = vrot.slane %v7006_v4, 3  ;;  %v2606_v59 = vrot.slane %v2604_v49, 2 }
  0xfe   : > { %v4321_v1 = vsel %vm4160_vm6, %v4311_v55, %v4320_v60  ;;  %v2612_v62 = vrot.slane %v2610_v53, 1  ;;  %v2619_v2 = vshrl.u32 %v7025_v40, 16  ;;  %v2622_v4 = vshll.u32 %v7025_v40, 16 }
  0xff   : > { %v4329_v6 = vor.u32 %v4328_v0, %v4325_v3  ;;  %v4808_v22 = vsel %vm4805_vm7, %v4806_v10, %v4807_v11  ;;  %v4810_v27 = vsel %vm4805_vm7, %v4807_v11, %v4809_v19  ;;  %v7027_v3 = vld [vmem:[%s7200_s9 + $0x80] sm:$0xff]   ;;  %v4821_v10 = vrot.slane %v7020_v38, 3 }
 0x100   : > { %v2624_v13 = vrot.slane %v2622_v4, 2  ;;  %v7037_v4 = vld [vmem:[%s7200_s9 + $0xa0] ss:$0 sps:$4 sm:$0x77]  }
 0x101   : > { %v4330_v14 = vsel %vm4160_vm6, %v4320_v60, %v4329_v6  ;;  %v7022_v6 = vld [vmem:[%s7200_s9 + $0x58] sm:$0xff]  }
 0x102   : > { %v4823_v15 = vrot.slane %v7022_v6, 3  ;;  %v4841_v6 = vrot.slane %v7037_v4, 3 }
 0x104   : > { %6307 = vmatmul.mubr.msk.bf16.gmra.mrb[8].mxu1 %vm370_vm1, %v1993_v16  ;;  %6471 = vmatmul.mubr.msk.bf16.gmra.mrb[20].mxu0 %vm370_vm1, %v4276_v25  ;;  %v2008_v16 = vrot.slane %v7009_v9, 1  ;;  %v7015_v25 = vld [vmem:[%s7200_s9 + $0x90] sm:$0xff]   ;;  %v2631_v9 = vshll.u32 %v7027_v3, 16 }
 0x105   : > { %6310 = vmatprep.mubr.msk.bf16.mxu1 %vm370_vm1, %v1995_v20  ;;  %6474 = vmatprep.mubr.msk.bf16.mxu0 %vm370_vm1, %v4285_v30  ;;  %v4812_v30 = vsel %vm4805_vm7, %v4809_v19, %v4811_v23  ;;  %v2014_v32 = vrot.slane %v7015_v25, 1  ;;  %v4824_v25 = vsel %vm4805_vm7, %v4821_v10, %v4823_v15 }
 0x106   : > { %v2009_v20 = vsel %vm1469_vm5, %v2006_v5, %v2008_v16  ;;  %v2011_v24 = vsel %vm1469_vm5, %v2008_v16, %v2010_v18  ;;  %v2633_v17 = vrot.slane %v2631_v9, 2 }
 0x107   : > { %v2015_v41 = vsel %vm1469_vm5, %v2012_v29, %v2014_v32 }
 0x10c   : > { %6311 = vmatmul.mubr.msk.bf16.gmra.mrb[12].mxu1 %vm370_vm1, %v1997_v37  ;;  %6475 = vmatmul.mubr.msk.bf16.gmra.mrb[24].mxu0 %vm370_vm1, %v4294_v46  ;;  %v2013_v37 = vsel %vm1469_vm5, %v2010_v18, %v2012_v29  ;;  %v7016_v46 = vld [vmem:[%s7200_s9 + $0x40] sm:$0xff]   ;;  %v7031_v18 = vld [vmem:[%s7200_s9 + $0x90] sm:$0xff]  }
 0x10d   : > { %6314 = vmatprep.mubr.msk.bf16.mxu1 %vm370_vm1, %v1999_v42  ;;  %6478 = vmatprep.mubr.msk.bf16.mxu0 %vm370_vm1, %v4303_v51  ;;  %v2594_v42 = vrot.slane %v2592_v33, 1  ;;  %v7018_v51 = vld [vmem:[%s7200_s9 + $0x48] sm:$0xff]   ;;  %v4817_v55 = vrot.slane %v7016_v46, 3  ;;  %v2646_v28 = vshrl.u32 %v7031_v18, 16  ;;  %v2649_v29 = vshll.u32 %v7031_v18, 16  ;;  %v7030_v46 = vld [vmem:[%s7200_s9 + $0x78] sm:$0xff]  }
 0x10e   : > { %v4819_v60 = vrot.slane %v7018_v51, 3  ;;  %v2660_v51 = vrot.slane %v2658_v44, 2 }
 0x10f   : > { %v2598_v52 = vor.u32 %v2597_v43, %v2594_v42  ;;  %v4818_v0 = vsel %vm4805_vm7, %v4815_v57, %v4817_v55  ;;  %v2648_v39 = vrot.slane %v2646_v28, 1  ;;  %v2651_v7 = vrot.slane %v2649_v29, 2 }
 0x110   : > { %v4820_v5 = vsel %vm4805_vm7, %v4817_v55, %v4819_v60  ;;  %v4822_v19 = vsel %vm4805_vm7, %v4819_v60, %v4821_v10  ;;  %v2655_v43 = vshrl.u32 %v7033_v34, 16  ;;  %v7032_v55 = vld [vmem:[%s7200_s9 + $0x80] sm:$0xff]  }
 0x111   : > { %v4833_v40 = vrot.slane %v7032_v55, 3 }
 0x114   : > { %6315 = vmatmul.mubr.msk.bf16.gmra.mrb[16].mxu1 %vm370_vm1, %v2001_v56  ;;  %6479 = vmatmul.mubr.msk.bf16.gmra.mrb[28].mxu0 %vm370_vm1, %v4312_v63  ;;  %v2017_v56 = vsel %vm1469_vm5, %v2014_v32, %v2016_v47  ;;  %v2615_v63 = vrot.slane %v2613_v54, 2  ;;  %v2652_v47 = vor.u32 %v2651_v7, %v2648_v39 }
 0x115   : > { %6318 = vmatprep.mubr.msk.bf16.mxu1 %vm370_vm1, %v2003_v61  ;;  %6482 = vmatprep.mubr.msk.bf16.mxu0 %vm370_vm1, %v4321_v1  ;;  %v2599_v61 = vsel %vm2492_vm2, %v7272_v36, %v2598_v52  ;;  %v2607_v1 = vor.u32 %v2606_v59, %v2603_v58  ;;  %v2628_v36 = vshrl.u32 %v7027_v3, 16  ;;  %v7034_v59 = vld [vmem:[%s7200_s9 + $0x88] sm:$0xff]  }
 0x117   : > { %v2608_v11 = vsel %vm2492_vm2, %v2598_v52, %v2607_v1  ;;  %v4831_v52 = vrot.slane %v7030_v46, 3 }
 0x11c   : > { %6319 = vmatmul.mubr.msk.bf16.gmra.mrb[20].mxu1 %vm370_vm1, %v2005_v8  ;;  %6483 = vmatmul.mubr.msk.bf16.gmra.mrb[32].mxu0 %vm370_vm1, %v4330_v14  ;;  %v2616_v8 = vor.u32 %v2615_v63, %v2612_v62  ;;  %v7029_v14 = vld [vmem:[%s7200_s9 + $0x88] sm:$0xff]   ;;  %v4834_v62 = vsel %vm4805_vm7, %v4831_v52, %v4833_v40  ;;  %v7035_v63 = vld [vmem:[%s7200_s9 + $0x90] sm:$0xff]  }
 0x11d   : > { %6322 = vmatprep.mubr.msk.bf16.mxu1 %vm370_vm1, %v2007_v12  ;;  %6488 = vmatprep.mubr.msk.bf16.mxu0 %vm370_vm1, %v4808_v22  ;;  %v2621_v12 = vrot.slane %v2619_v2, 1  ;;  %v2630_v22 = vrot.slane %v2628_v36, 1  ;;  %v2637_v23 = vshrl.u32 %v7029_v14, 16  ;;  %v4837_v38 = vrot.slane %v7035_v63, 3 }
 0x11e   : > { %v2617_v16 = vsel %vm2492_vm2, %v2607_v1, %v2616_v8 }
 0x11f   : > { %v2625_v21 = vor.u32 %v2624_v13, %v2621_v12  ;;  %v2639_v32 = vrot.slane %v2637_v23, 1 }
 0x121   : > { %v2626_v31 = vsel %vm2492_vm2, %v2616_v8, %v2625_v21 }
 0x124   : > { %6323 = vmatmul.mubr.msk.bf16.gmra.mrb[24].mxu1 %vm370_vm1, %v2009_v20  ;;  %6489 = vmatmul.mubr.msk.bf16.vlgmr.msra.gmra.mrb[0].mxu0 %vm370_vm1, %v4810_v27  ;;  %v7024_v20 = vld [vmem:[%s7200_s9 + $0x60] sm:$0xff]   ;;  %v2634_v27 = vor.u32 %v2633_v17, %v2630_v22 }
 0x125   : > { %6326 = vmatprep.mubr.msk.bf16.mxu1 %vm370_vm1, %v2011_v24  ;;  %6492 = vmatprep.mubr.msk.bf16.mxu0 %vm370_vm1, %v4812_v30  ;;  %v2640_v24 = vshll.u32 %v7029_v14, 16  ;;  %v4825_v30 = vrot.slane %v7024_v20, 3 }
 0x127   : > { %v2642_v33 = vrot.slane %v2640_v24, 2  ;;  %v4826_v57 = vsel %vm4805_vm7, %v4823_v15, %v4825_v30 }
 0x129   : > { %v2643_v42 = vor.u32 %v2642_v33, %v2639_v32 }
 0x12b   : > { %v2644_v49 = vsel %vm2492_vm2, %v2634_v27, %v2643_v42  ;;  %v2653_v53 = vsel %vm2492_vm2, %v2643_v42, %v2652_v47 }
 0x12c   : > { %6327 = vmatmul.mubr.msk.bf16.gmra.mrb[28].mxu1 %vm370_vm1, %v2013_v37  ;;  %6493 = vmatmul.mubr.msk.bf16.gmra.mrb[4].mxu0 %vm370_vm1, %v4814_v45  ;;  %v2635_v37 = vsel %vm2492_vm2, %v2625_v21, %v2634_v27  ;;  %v4828_v45 = vsel %vm4805_vm7, %v4825_v30, %v4827_v35 }
 0x12d   : > { %6330 = vmatprep.mubr.msk.bf16.mxu1 %vm370_vm1, %v2015_v41  ;;  %6496 = vmatprep.mubr.msk.bf16.mxu0 %vm370_vm1, %v4816_v50  ;;  %v7028_v41 = vld [vmem:[%s7200_s9 + $0x70] sm:$0xff]   ;;  %v2657_v50 = vrot.slane %v2655_v43, 1 }
 0x12e   : > { %v4829_v48 = vrot.slane %v7028_v41, 3 }
 0x130   : > { %v4830_v54 = vsel %vm4805_vm7, %v4827_v35, %v4829_v48  ;;  %v4832_v58 = vsel %vm4805_vm7, %v4829_v48, %v4831_v52 }
 0x134   : > { %6331 = vmatmul.mubr.msk.bf16.gmra.mrb[32].mxu1 %vm370_vm1, %v2017_v56  ;;  %6497 = vmatmul.mubr.msk.bf16.gmra.mrb[8].mxu0 %vm370_vm1, %v4818_v0  ;;  %v2661_v56 = vor.u32 %v2660_v51, %v2657_v50  ;;  %v7036_v0 = vld [vmem:[%s7200_s9 + $0x98] sm:$0xff]   ;;  %s6826_s9 = smul.u32 2304, %s7147_s16  ;;  %s7833_s16 = scalar_lea.sflag [#allocation4], %s161_s4 }
 0x135   : > { %6356 = vmatprep.mubr.msk.bf16.mxu1 %vm370_vm1, %v2599_v61  ;;  %6500 = vmatprep.mubr.msk.bf16.mxu0 %vm370_vm1, %v4820_v5  ;;  %v4835_v61 = vrot.slane %v7034_v59, 3  ;;  %v4839_v1 = vrot.slane %v7036_v0, 3 }
 0x136   : > { %v2662_v60 = vsel %vm2492_vm2, %v2652_v47, %v2661_v56  ;;  %s7825_s19 = scalar_lea.hbm %s7877_s3, %s6826_s9 }
 0x137   : > { %v4836_v3 = vsel %vm4805_vm7, %v4833_v40, %v4835_v61  ;;  %v4838_v2 = vsel %vm4805_vm7, %v4835_v61, %v4837_v38  ;;  %v4840_v5 = vsel %vm4805_vm7, %v4837_v38, %v4839_v1  ;;  %v4842_v8 = vsel %vm4805_vm7, %v4839_v1, %v4841_v6 }
 0x13c   : > { %6357 = vmatmul.mubr.msk.bf16.vlgmr.msra.gmra.mrb[20].mxu1 %vm370_vm1, %v2608_v11  ;;  %6501 = vmatmul.mubr.msk.bf16.gmra.mrb[12].mxu0 %vm370_vm1, %v4822_v19 }
 0x13d   : > { %6360 = vmatprep.mubr.msk.bf16.mxu1 %vm370_vm1, %v2617_v16  ;;  %6504 = vmatprep.mubr.msk.bf16.mxu0 %vm370_vm1, %v4824_v25 }
 0x144   : > { %6361 = vmatmul.mubr.msk.bf16.gmra.mrb[24].mxu1 %vm370_vm1, %v2626_v31  ;;  %6505 = vmatmul.mubr.msk.bf16.gmra.mrb[16].mxu0 %vm370_vm1, %v4826_v57  ;;  %v7754_v31 = vld [vmem:[%s7876_s2] ss:$0 sm:$0xff] }
 0x145   : > { %6364 = vmatprep.mubr.msk.bf16.mxu1 %vm370_vm1, %v2635_v37  ;;  %6508 = vmatprep.mubr.msk.bf16.mxu0 %vm370_vm1, %v4828_v45 }
 0x14c   : > { %6365 = vmatmul.mubr.msk.bf16.gmra.mrb[28].mxu1 %vm370_vm1, %v2644_v49  ;;  %6509 = vmatmul.mubr.msk.bf16.gmra.mrb[20].mxu0 %vm370_vm1, %v4830_v54 }
 0x14d   : > { %6368 = vmatprep.mubr.msk.bf16.mxu1 %vm370_vm1, %v2653_v53  ;;  %6512 = vmatprep.mubr.msk.bf16.mxu0 %vm370_vm1, %v4832_v58 }
 0x154   : > { %6369 = vmatmul.mubr.msk.bf16.gmra.mrb[32].mxu1 %vm370_vm1, %v2662_v60  ;;  %6513 = vmatmul.mubr.msk.bf16.gmra.mrb[24].mxu0 %vm370_vm1, %v4834_v62 }
 0x155   : > { %6516 = vmatprep.mubr.msk.bf16.mxu0 %vm370_vm1, %v4836_v3 }
 0x15c   : > { %6517 = vmatmul.mubr.msk.bf16.gmra.mrb[28].mxu0 %vm370_vm1, %v4838_v2 }
 0x15d   : > { %6520 = vmatprep.mubr.msk.bf16.mxu0 %vm370_vm1, %v4840_v5 }
 0x164   : > { %6521 = vmatmul.mubr.msk.bf16.gmra.mrb[32].mxu0 %vm370_vm1, %v4842_v8 }
 0x1c7   : > { %v6300_v36 = vpop.f32.mrb[0].mxu1 }
 0x1c8   : > { %v2109_v9 = vpop.f32.mrb[1].mxu1 }
 0x1c9   : > { %v6301_v10 = vpop.f32.mrb[2].mxu1 }
 0x1ca   : > { %v2112_v11 = vpop.f32.mrb[3].mxu1 }
 0x1cf   : > { %v6304_v12 = vpop.f32.mrb[4].mxu1 }
 0x1d0   : > { %v2125_v13 = vpop.f32.mrb[5].mxu1 }
 0x1d1   : > { %v6305_v14 = vpop.f32.mrb[6].mxu1 }
 0x1d2   : > { %v2128_v15 = vpop.f32.mrb[7].mxu1 }
 0x1d7   : > { %v6308_v16 = vpop.f32.mrb[8].mxu1 }
 0x1d8   : > { %v2141_v22 = vpop.f32.mrb[9].mxu1 }
 0x1d9   : > { %v6309_v17 = vpop.f32.mrb[10].mxu1 }
 0x1da   : > { %v2144_v18 = vpop.f32.mrb[11].mxu1 }
 0x1df   : > { %v7734_v19 = vpop.f32.mrb[12].mxu1 }
 0x1e0   : > { %v7736_v20 = vpop.f32.mrb[13].mxu1 }
 0x1e1   : > { %v7738_v21 = vpop.f32.mrb[14].mxu1 }
 0x1e2   : > { %v7740_v23 = vpop.f32.mrb[15].mxu1 }
 0x1e7   : > { %v7742_v24 = vpop.f32.mrb[16].mxu1 }
 0x1e8   : > { %v7744_v25 = vpop.f32.mrb[17].mxu1 }
 0x1e9   : > { %v7746_v26 = vpop.f32.mrb[18].mxu1 }
 0x1ea   : > { %v7748_v27 = vpop.f32.mrb[19].mxu1 }
 0x1f7   : > { %v6490_v28 = vpop.f32.mrb[0].mxu0 }
 0x1f8   : > { %v6526_v29 = vadd.f32 %v6490_v28, %v6300_v36  ;;  %v4934_v30 = vpop.f32.mrb[1].mxu0 }
 0x1f9   : > { %v6527_v32 = vadd.f32 %v4934_v30, %v2109_v9  ;;  %v6491_v33 = vpop.f32.mrb[2].mxu0 }
 0x1fa   : > { %v6528_v34 = vadd.f32 %v6491_v33, %v6301_v10  ;;  %v4937_v35 = vpop.f32.mrb[3].mxu0  ;;  %v5193_v39 = vadd.f32 %v6526_v29, %v7754_v31 }
 0x1fb   : > { %v6529_v37 = vadd.f32 %v4937_v35, %v2112_v11  ;;  %v5191_v57 = vadd.f32 %v6527_v32, %v7754_v31 }
 0x1fc   : > { %v5194_v7 = vadd.f32 %v6528_v34, %v7754_v31 }
 0x1fd   : > { %v5192_v41 = vadd.f32 %v6529_v37, %v7754_v31 }
 0x1fe   : > { %v5912_v42 = vpack.c.bf16 %v5194_v7, %v5193_v39 }
 0x1ff   : > { %v5907_v43 = vpack.c.bf16 %v5192_v41, %v5191_v57  ;;  %v6494_v44 = vpop.f32.mrb[4].mxu0 }
 0x200   : > { %5994 = vst [vmem:[%s7762_s8 + $0x8] sm:$0xff] %v5912_v42   ;;  %v6530_v45 = vadd.f32 %v6494_v44, %v6304_v12  ;;  %v4950_v46 = vpop.f32.mrb[5].mxu0 }
 0x201   : > { %5908 = vst [vmem:[%s7762_s8] sm:$0xff] %v5907_v43   ;;  %v6531_v47 = vadd.f32 %v4950_v46, %v2125_v13  ;;  %v6495_v48 = vpop.f32.mrb[6].mxu0 }
 0x202   : > { %v6532_v49 = vadd.f32 %v6495_v48, %v6305_v14  ;;  %v4953_v50 = vpop.f32.mrb[7].mxu0  ;;  %v5197_v52 = vadd.f32 %v6530_v45, %v7754_v31 }
 0x203   : > { %v6533_v51 = vadd.f32 %v4953_v50, %v2128_v15  ;;  %v5195_v54 = vadd.f32 %v6531_v47, %v7754_v31 }
 0x204   : > { %v5198_v53 = vadd.f32 %v6532_v49, %v7754_v31 }
 0x205   : > { %v5196_v55 = vadd.f32 %v6533_v51, %v7754_v31 }
 0x206   : > { %v5922_v56 = vpack.c.bf16 %v5198_v53, %v5197_v52 }
 0x207   : > { %v5917_v58 = vpack.c.bf16 %v5196_v55, %v5195_v54  ;;  %v6498_v59 = vpop.f32.mrb[8].mxu0 }
 0x208   : > { %5996 = vst [vmem:[%s7762_s8 + $0x18] sm:$0xff] %v5922_v56   ;;  %v6534_v40 = vadd.f32 %v6498_v59, %v6308_v16  ;;  %v4966_v60 = vpop.f32.mrb[9].mxu0 }
 0x209   : > { %5995 = vst [vmem:[%s7762_s8 + $0x10] sm:$0xff] %v5917_v58   ;;  %v6535_v61 = vadd.f32 %v4966_v60, %v2141_v22  ;;  %v6499_v62 = vpop.f32.mrb[10].mxu0 }
 0x20a   : > { %v6536_v63 = vadd.f32 %v6499_v62, %v6309_v17  ;;  %v4969_v3 = vpop.f32.mrb[11].mxu0  ;;  %v5201_v1 = vadd.f32 %v6534_v40, %v7754_v31 }
 0x20b   : > { %v6537_v0 = vadd.f32 %v4969_v3, %v2144_v18  ;;  %v5199_v5 = vadd.f32 %v6535_v61, %v7754_v31 }
 0x20c   : > { %v5202_v2 = vadd.f32 %v6536_v63, %v7754_v31 }
 0x20d   : > { %v5200_v6 = vadd.f32 %v6537_v0, %v7754_v31 }
 0x20e   : > { %v5932_v36 = vpack.c.bf16 %v5202_v2, %v5201_v1 }
 0x20f   : > { %v6358_v38 = vpop.f32.mrb[20].mxu1  ;;  %v5927_v10 = vpack.c.bf16 %v5200_v6, %v5199_v5  ;;  %v6502_v11 = vpop.f32.mrb[12].mxu0 }
 0x210   : > { %v2834_v4 = vpop.f32.mrb[21].mxu1  ;;  %5998 = vst [vmem:[%s7762_s8 + $0x28] sm:$0xff] %v5932_v36   ;;  %v6538_v12 = vadd.f32 %v6502_v11, %v7734_v19  ;;  %v4982_v13 = vpop.f32.mrb[13].mxu0 }
 0x211   : > { %v6359_v8 = vpop.f32.mrb[22].mxu1  ;;  %5997 = vst [vmem:[%s7762_s8 + $0x20] sm:$0xff] %v5927_v10   ;;  %v6539_v14 = vadd.f32 %v4982_v13, %v7736_v20  ;;  %v6503_v15 = vpop.f32.mrb[14].mxu0 }
 0x212   : > { %v2837_v9 = vpop.f32.mrb[23].mxu1  ;;  %v6540_v16 = vadd.f32 %v6503_v15, %v7738_v21  ;;  %v4985_v22 = vpop.f32.mrb[15].mxu0  ;;  %v5205_v28 = vadd.f32 %v6538_v12, %v7754_v31 }
 0x213   : > { %v6541_v17 = vadd.f32 %v4985_v22, %v7740_v23  ;;  %v5203_v19 = vadd.f32 %v6539_v14, %v7754_v31 }
 0x214   : > { %v5206_v29 = vadd.f32 %v6540_v16, %v7754_v31 }
 0x215   : > { %v5204_v32 = vadd.f32 %v6541_v17, %v7754_v31 }
 0x216   : > { %v5942_v20 = vpack.c.bf16 %v5206_v29, %v5205_v28 }
 0x217   : > { %v6362_v18 = vpop.f32.mrb[24].mxu1  ;;  %v5937_v35 = vpack.c.bf16 %v5204_v32, %v5203_v19  ;;  %v6506_v37 = vpop.f32.mrb[16].mxu0 }
 0x218   : > { %v2850_v30 = vpop.f32.mrb[25].mxu1  ;;  %6000 = vst [vmem:[%s7762_s8 + $0x38] sm:$0xff] %v5942_v20   ;;  %v6542_v21 = vadd.f32 %v6506_v37, %v7742_v24  ;;  %v4998_v39 = vpop.f32.mrb[17].mxu0 }
 0x219   : > { %v6363_v33 = vpop.f32.mrb[26].mxu1  ;;  %5999 = vst [vmem:[%s7762_s8 + $0x30] sm:$0xff] %v5937_v35   ;;  %v6543_v23 = vadd.f32 %v4998_v39, %v7744_v25  ;;  %v6507_v7 = vpop.f32.mrb[18].mxu0 }
 0x21a   : > { %v2853_v34 = vpop.f32.mrb[27].mxu1  ;;  %v6544_v57 = vadd.f32 %v6507_v7, %v7746_v26  ;;  %v5001_v41 = vpop.f32.mrb[19].mxu0  ;;  %v5209_v44 = vadd.f32 %v6542_v21, %v7754_v31 }
 0x21b   : > { %v6545_v42 = vadd.f32 %v5001_v41, %v7748_v27  ;;  %v5207_v24 = vadd.f32 %v6543_v23, %v7754_v31 }
 0x21c   : > { %v5210_v45 = vadd.f32 %v6544_v57, %v7754_v31 }
 0x21d   : > { %v5208_v47 = vadd.f32 %v6545_v42, %v7754_v31 }
 0x21e   : > { %v5952_v25 = vpack.c.bf16 %v5210_v45, %v5209_v44 }
 0x21f   : > { %v6366_v43 = vpop.f32.mrb[28].mxu1  ;;  %v5947_v50 = vpack.c.bf16 %v5208_v47, %v5207_v24  ;;  %v6510_v51 = vpop.f32.mrb[20].mxu0 }
 0x220   : > { %v2866_v46 = vpop.f32.mrb[29].mxu1  ;;  %6002 = vst [vmem:[%s7762_s8 + $0x48] sm:$0xff] %v5952_v25   ;;  %v6546_v26 = vadd.f32 %v6510_v51, %v6358_v38  ;;  %v5014_v52 = vpop.f32.mrb[21].mxu0 }
 0x221   : > { %v6367_v48 = vpop.f32.mrb[30].mxu1  ;;  %6001 = vst [vmem:[%s7762_s8 + $0x40] sm:$0xff] %v5947_v50   ;;  %v6547_v27 = vadd.f32 %v5014_v52, %v2834_v4  ;;  %v6511_v53 = vpop.f32.mrb[22].mxu0 }
 0x222   : > { %v2869_v49 = vpop.f32.mrb[31].mxu1  ;;  %v6548_v54 = vadd.f32 %v6511_v53, %v6359_v8  ;;  %v5017_v55 = vpop.f32.mrb[23].mxu0  ;;  %v5213_v59 = vadd.f32 %v6546_v26, %v7754_v31 }
 0x223   : > { %v6549_v56 = vadd.f32 %v5017_v55, %v2837_v9  ;;  %v5211_v61 = vadd.f32 %v6547_v27, %v7754_v31 }
 0x224   : > { %v5214_v40 = vadd.f32 %v6548_v54, %v7754_v31 }
 0x225   : > { %v5212_v62 = vadd.f32 %v6549_v56, %v7754_v31 }
 0x226   : > { %v5962_v3 = vpack.c.bf16 %v5214_v40, %v5213_v59 }
 0x227   : > { %v6370_v58 = vpop.f32.mrb[32].mxu1  ;;  %v5957_v38 = vpack.c.bf16 %v5212_v62, %v5211_v61  ;;  %v6514_v1 = vpop.f32.mrb[24].mxu0 }
 0x228   : > { %v2882_v60 = vpop.f32.mrb[33].mxu1  ;;  %6004 = vst [vmem:[%s7762_s8 + $0x58] sm:$0xff] %v5962_v3   ;;  %v6550_v2 = vadd.f32 %v6514_v1, %v6362_v18  ;;  %v5030_v4 = vpop.f32.mrb[25].mxu0 }
 0x229   : > { %v6371_v63 = vpop.f32.mrb[34].mxu1  ;;  %6003 = vst [vmem:[%s7762_s8 + $0x50] sm:$0xff] %v5957_v38   ;;  %v6551_v5 = vadd.f32 %v5030_v4, %v2850_v30  ;;  %v6515_v6 = vpop.f32.mrb[26].mxu0 }
 0x22a   : > { %v2885_v0 = vpop.f32.mrb[35].mxu1  ;;  %v6552_v8 = vadd.f32 %v6515_v6, %v6363_v33  ;;  %v5033_v36 = vpop.f32.mrb[27].mxu0  ;;  %v5217_v10 = vadd.f32 %v6550_v2, %v7754_v31 }
 0x22b   : > { %v6553_v9 = vadd.f32 %v5033_v36, %v2853_v34  ;;  %v5215_v12 = vadd.f32 %v6551_v5, %v7754_v31 }
 0x22c   : > { %v5218_v11 = vadd.f32 %v6552_v8, %v7754_v31 }
 0x22d   : > { %v5216_v13 = vadd.f32 %v6553_v9, %v7754_v31 }
 0x22e   : > { %v5972_v14 = vpack.c.bf16 %v5218_v11, %v5217_v10 }
 0x22f   : > { %v5967_v15 = vpack.c.bf16 %v5216_v13, %v5215_v12  ;;  %v6518_v16 = vpop.f32.mrb[28].mxu0 }
 0x230   : > { %6006 = vst [vmem:[%s7762_s8 + $0x68] sm:$0xff] %v5972_v14   ;;  %v6554_v22 = vadd.f32 %v6518_v16, %v6366_v43  ;;  %v5046_v17 = vpop.f32.mrb[29].mxu0 }
 0x231   : > { %6005 = vst [vmem:[%s7762_s8 + $0x60] sm:$0xff] %v5967_v15   ;;  %v6555_v18 = vadd.f32 %v5046_v17, %v2866_v46  ;;  %v6519_v28 = vpop.f32.mrb[30].mxu0 }
 0x232   : > { %v6556_v29 = vadd.f32 %v6519_v28, %v6367_v48  ;;  %v5049_v30 = vpop.f32.mrb[31].mxu0  ;;  %v5221_v32 = vadd.f32 %v6554_v22, %v7754_v31 }
 0x233   : > { %v6557_v19 = vadd.f32 %v5049_v30, %v2869_v49  ;;  %v5219_v20 = vadd.f32 %v6555_v18, %v7754_v31 }
 0x234   : > { %v5222_v33 = vadd.f32 %v6556_v29, %v7754_v31 }
 0x235   : > { %v5220_v34 = vadd.f32 %v6557_v19, %v7754_v31 }
 0x236   : > { %v5982_v35 = vpack.c.bf16 %v5222_v33, %v5221_v32 }
 0x237   : > { %v5977_v37 = vpack.c.bf16 %v5220_v34, %v5219_v20  ;;  %v6522_v21 = vpop.f32.mrb[32].mxu0 }
 0x238   : > { %6008 = vst [vmem:[%s7762_s8 + $0x78] sm:$0xff] %v5982_v35   ;;  %v6558_v39 = vadd.f32 %v6522_v21, %v6370_v58  ;;  %v5062_v23 = vpop.f32.mrb[33].mxu0 }
 0x239   : > { %6007 = vst [vmem:[%s7762_s8 + $0x70] sm:$0xff] %v5977_v37   ;;  %v6559_v7 = vadd.f32 %v5062_v23, %v2882_v60  ;;  %v6523_v57 = vpop.f32.mrb[34].mxu0 }
 0x23a   : > { %v6560_v41 = vadd.f32 %v6523_v57, %v6371_v63  ;;  %v5065_v42 = vpop.f32.mrb[35].mxu0  ;;  %v5225_v44 = vadd.f32 %v6558_v39, %v7754_v31 }
 0x23b   : > { %v6561_v43 = vadd.f32 %v5065_v42, %v2885_v0  ;;  %v5223_v46 = vadd.f32 %v6559_v7, %v7754_v31 }
 0x23c   : > { %v5226_v45 = vadd.f32 %v6560_v41, %v7754_v31 }
 0x23d   : > { %v5224_v24 = vadd.f32 %v6561_v43, %v7754_v31 }
 0x23e   : > { %v5992_v47 = vpack.c.bf16 %v5226_v45, %v5225_v44 }
 0x23f   : > { %v5987_v48 = vpack.c.bf16 %v5224_v24, %v5223_v46 }
 0x240   : > { %6010 = vst [vmem:[%s7762_s8 + $0x88] sm:$0xff] %v5992_v47  }
 0x241   : > { %6009 = vst [vmem:[%s7762_s8 + $0x80] sm:$0xff] %v5987_v48  }
 0x242   : > { %7052 = shalt.err (!%p7049_p3)
}
 0x243   : > { %s7053_s27 = scalar_lea.hbm %s7825_s19, 2304  ;;  %s7057_s30 = scalar_lea.hbm %s7877_s3, 4608 }
 0x244   : > { %p7054_p4 = scmp.ne.s32.totalorder %s7825_s19, %s7053_s27  ;;  %p7058_p9 = scmp.lt.u32.totalorder %s7825_s19, %s7877_s3 }
 0x245   : > { %p7059_p10 = scmp.lt.u32.totalorder %s7057_s30, %s7053_s27  ;;  %p7061_p12 = scmp.lt.u32.totalorder %s7053_s27, %s7825_s19 }
 0x246   : > { %p7055_p7 = pnand %p7054_p4, %p7164_p5 }
 0x247   : > { %p7060_p11 = por %p7059_p10, %p7058_p9 }
 0x248   : > { %p7056_p8 = pneg %p7055_p7 }
 0x249   : > { %p7062_p13 = por %p7061_p12, %p7060_p11 }
 0x24b   : > { %p7063_p0 = pnand %p7062_p13, %p7056_p8 }
 0x24d   : > { %7066 = shalt.err (!%p7063_p0)
}
 0x24e   : > { %s7104_s6 = smov 64   ;;  %s7105_s7 = smov 4  }
 0x24f   : > { %6827 = dma.vmem_to_hbm [thread:$0]  (%p7164_p5), %s7827_s10, 2304, %s7825_s19, %s7833_s16, %s7104_s6, %s7104_s6, %s7105_s7  }
 0x250 PF: > { %p6833_p1 = scmp.ge.s32.totalorder %s7101_s15, 2  ;;  %s5436_s8 = sand.u32 1, %s7089_s12  }
 0x251   : > { %s5437_s9 = scalar_lea.sflag [#allocation4], %s5436_s8 }
 0x252   : > { %p6830_p2 = pnand %p6833_p1, %p7168_p6 }
 0x254   : > { %7084 = dma.done.wait (!%p6830_p2), %s5437_s9, 2304  }
 0x255   : > { %7086 = vsyncadd (!%p6830_p2), %s5437_s9, 4294964992  ;;  %p13_p3 = scmp.ge.s32.totalorder %s7151_s18, 4   ;;  %s7880_s12 = smov %s7093_s13 }
 0x256   : > { %s7881_s13 = smov %s7097_s14  ;;  %s7882_s14 = smov %s7162_s21 }
 0x257   : > { %s7883_s15 = smov %s7151_s18  ;;  %15 = sbr.rel (!%p13_p3) target bundleno = 3 (0x3), region = 75 }
 0x25e   :  { %5442 = vsyncpa [#allocation4], 1 }
 0x25f   :  { %5444 = vsyncpa [#allocation4 + $0x1], 1 }

</bundles_post_ra>
